<compile_context>
chip_gen: v7x
topology: tpu7x:2x2x1
jax: 0.10.0
libtpu: 0.0.40
codegen_flags: <defaults>
</compile_context>

<pallas_src>
import functools

import jax
import jax.numpy as jnp
from jax import lax
from jax.experimental import pallas as pl
from jax.experimental.pallas import tpu as pltpu

# ---------------- model hyperparameters (small, deterministic, synthetic) -------------
VOCAB_SIZE = 256
HIDDEN = 128
NUM_LAYERS = 2
NUM_HEADS = 4
NUM_KV_HEADS = 2
HEAD_DIM = HIDDEN // NUM_HEADS          # 32
INTERMEDIATE = 256
RMS_EPS = 1e-6
ROPE_THETA = 10000.0
LOGIT_SCALE = 1.0
SEQ = 8
DTYPE = jnp.float32                      # activation / norm dtype (v5e-safe elementwise)
WEIGHT_DTYPE = jnp.bfloat16              # MXU operand dtype for the large matmuls

QKV_OUT = (NUM_HEADS + 2 * NUM_KV_HEADS) * HEAD_DIM   # 256
GU_OUT = 2 * INTERMEDIATE                               # 512
GROUP = NUM_HEADS // NUM_KV_HEADS


# ------------------------------ fused forward kernel ----------------------------------
def _fused_forward_kernel(x_ref, cos_ref, sin_ref,
                          ln1_ref, wqkv_ref, wo_ref,
                          ln2_ref, wgu_ref, wd_ref,
                          lnf_ref, o_ref,
                          *, num_layers, eps, scale):
    S, H = x_ref.shape
    D = HEAD_DIM
    half = D // 2

    x = x_ref[...].astype(jnp.float32)                 # [S, H]
    cos = cos_ref[...].astype(jnp.float32)             # [S, D]
    sin = sin_ref[...].astype(jnp.float32)             # [S, D]

    # Hoisted causal mask (shared across layers / heads).
    row = lax.broadcasted_iota(jnp.int32, (S, S), 0)
    col = lax.broadcasted_iota(jnp.int32, (S, S), 1)
    causal = col <= row
    neg_big = jnp.float32(-1e30)

    def rms(t, w):                                     # t: [S,H] f32, w: [1,H]
        var = jnp.mean(t * t, axis=-1, keepdims=True)
        return t * lax.rsqrt(var + eps) * w.astype(jnp.float32)

    def rope(t):                                       # t: [S, D] f32 (one head)
        rot = jnp.concatenate([-t[:, half:], t[:, :half]], axis=-1)
        return t * cos + rot * sin

    for l in range(num_layers):                        # static unroll (NUM_LAYERS=2)
        # ------------------------- attention block -------------------------
        h = rms(x, ln1_ref[l])
        qkv = jnp.dot(h.astype(WEIGHT_DTYPE), wqkv_ref[l],
                      preferred_element_type=jnp.float32)          # [S, 256]
        q_off = NUM_HEADS * D
        k_off = q_off + NUM_KV_HEADS * D

        q_heads = [rope(qkv[:, i * D:(i + 1) * D]) for i in range(NUM_HEADS)]
        k_heads = [rope(qkv[:, q_off + g * D: q_off + (g + 1) * D])
                   for g in range(NUM_KV_HEADS)]
        v_heads = [qkv[:, k_off + g * D: k_off + (g + 1) * D]
                   for g in range(NUM_KV_HEADS)]

        outs = []
        for hq in range(NUM_HEADS):                    # static unroll over 4 heads
            kh = k_heads[hq // GROUP]
            vh = v_heads[hq // GROUP]
            # q @ k^T without materializing k.T
            s = lax.dot_general(q_heads[hq], kh, (((1,), (1,)), ((), ())),
                                preferred_element_type=jnp.float32) * scale  # [S,S]
            s = jnp.where(causal, s, neg_big)
            m = jnp.max(s, axis=-1, keepdims=True)
            p = jnp.exp(s - m)
            p = p * pl.reciprocal(jnp.sum(p, axis=-1, keepdims=True), approx=True)
            outs.append(jnp.dot(p, vh, preferred_element_type=jnp.float32))
        attn = jnp.concatenate(outs, axis=-1)          # [S, H] lane-dense

        x = x + jnp.dot(attn.astype(WEIGHT_DTYPE), wo_ref[l],
                        preferred_element_type=jnp.float32)

        # ---------------------------- MLP block ----------------------------
        h = rms(x, ln2_ref[l])
        gu = jnp.dot(h.astype(WEIGHT_DTYPE), wgu_ref[l],
                     preferred_element_type=jnp.float32)           # [S, 512]
        g = gu[:, :INTERMEDIATE]
        u = gu[:, INTERMEDIATE:]
        act = (g * jax.nn.sigmoid(g)) * u              # SwiGLU (f32 elementwise)
        x = x + jnp.dot(act.astype(WEIGHT_DTYPE), wd_ref[l],
                        preferred_element_type=jnp.float32)

    o_ref[...] = rms(x, lnf_ref[...]).astype(o_ref.dtype)


def _logits_kernel(x_ref, w_ref, o_ref, *, scale):
    o_ref[...] = (jnp.dot(x_ref[...].astype(WEIGHT_DTYPE), w_ref[...],
                          preferred_element_type=jnp.float32) * scale
                  ).astype(o_ref.dtype)


# ------------------------------------ glue (JAX) --------------------------------------
def init_params(key):
    def nrm(k, shape, dtype, scl=0.02):
        return (scl * jax.random.normal(k, shape, jnp.float32)).astype(dtype)

    keys = jax.random.split(key, 2 + NUM_LAYERS)
    wqkv, wo, wgu, wd = [], [], [], []
    for i in range(NUM_LAYERS):
        lk = jax.random.split(keys[2 + i], 7)
        wq = nrm(lk[0], (HIDDEN, NUM_HEADS * HEAD_DIM), jnp.float32)
        wk = nrm(lk[1], (HIDDEN, NUM_KV_HEADS * HEAD_DIM), jnp.float32)
        wv = nrm(lk[2], (HIDDEN, NUM_KV_HEADS * HEAD_DIM), jnp.float32)
        wqkv.append(jnp.concatenate([wq, wk, wv], axis=1).astype(WEIGHT_DTYPE))
        wo.append(nrm(lk[3], (NUM_HEADS * HEAD_DIM, HIDDEN), WEIGHT_DTYPE))
        wg = nrm(lk[4], (HIDDEN, INTERMEDIATE), jnp.float32)
        wu = nrm(lk[5], (HIDDEN, INTERMEDIATE), jnp.float32)
        wgu.append(jnp.concatenate([wg, wu], axis=1).astype(WEIGHT_DTYPE))
        wd.append(nrm(lk[6], (INTERMEDIATE, HIDDEN), WEIGHT_DTYPE))

    return {
        "embed": nrm(keys[0], (VOCAB_SIZE, HIDDEN), DTYPE),
        "lm_head": nrm(keys[1], (HIDDEN, VOCAB_SIZE), WEIGHT_DTYPE),   # tie_word_embeddings=False
        "ln1": jnp.ones((NUM_LAYERS, 1, HIDDEN), jnp.float32),
        "ln2": jnp.ones((NUM_LAYERS, 1, HIDDEN), jnp.float32),
        "final_ln": jnp.ones((1, HIDDEN), jnp.float32),
        "wqkv": jnp.stack(wqkv),      # [L, H, 256]
        "wo": jnp.stack(wo),          # [L, H, H]
        "wgu": jnp.stack(wgu),        # [L, H, 512]
        "wd": jnp.stack(wd),          # [L, I, H]
    }


def forward(params, input_ids, positions):
    """Mirrors TransformersModel.forward: returns hidden states [num_tokens, hidden]."""
    S = input_ids.shape[0]
    # VocabParallelEmbedding lookup (gather — glue in JAX).
    x = jnp.take(params["embed"], input_ids, axis=0)                   # [S, H]

    # Llama rotate_half RoPE sin/cos tables (glue).
    inv_freq = 1.0 / (ROPE_THETA ** (jnp.arange(0, HEAD_DIM, 2, dtype=jnp.float32)
                                     / HEAD_DIM))
    freqs = positions.astype(jnp.float32)[:, None] * inv_freq[None, :]  # [S, D/2]
    cos = jnp.concatenate([jnp.cos(freqs), jnp.cos(freqs)], axis=-1)    # [S, D]
    sin = jnp.concatenate([jnp.sin(freqs), jnp.sin(freqs)], axis=-1)    # [S, D]

    kernel = functools.partial(_fused_forward_kernel,
                               num_layers=NUM_LAYERS, eps=RMS_EPS,
                               scale=HEAD_DIM ** -0.5)
    # Single fused pallas_call: whole model (weights <1 MB) resident in VMEM.
    return pl.pallas_call(
        kernel,
        out_shape=jax.ShapeDtypeStruct((S, HIDDEN), DTYPE),
    )(x, cos, sin,
      params["ln1"], params["wqkv"], params["wo"],
      params["ln2"], params["wgu"], params["wd"],
      params["final_ln"])


def compute_logits(params, hidden_states):
    """Mirrors TransformersModel.compute_logits (LogitsProcessor over ParallelLMHead)."""
    S = hidden_states.shape[0]
    return pl.pallas_call(
        functools.partial(_logits_kernel, scale=LOGIT_SCALE),
        out_shape=jax.ShapeDtypeStruct((S, VOCAB_SIZE), jnp.float32),
    )(hidden_states, params["lm_head"])


# TODO(synk): vLLM-side paged KV caches / AttentionMetadata and tensor-parallel sharding
# (ColumnParallelLinear / RowParallelLinear) have no single-device Pallas equivalent;
# this implements the single-rank, no-cache (use_cache=False) forward semantics.


if __name__ == "__main__":
    key = jax.random.PRNGKey(0)
    pkey, ikey = jax.random.split(key)
    params = init_params(pkey)

    input_ids = jax.random.randint(ikey, (SEQ,), 0, VOCAB_SIZE, dtype=jnp.int32)
    positions = jnp.arange(SEQ, dtype=jnp.int32)

    hidden = jax.jit(forward)(params, input_ids, positions)
    hidden = jax.block_until_ready(hidden)
    assert hidden.shape == (SEQ, HIDDEN) and hidden.dtype == DTYPE

    logits = jax.jit(compute_logits)(params, hidden)
    logits = jax.block_until_ready(logits)
    assert logits.shape == (SEQ, VOCAB_SIZE)

    print("KERNEL_OK")
</pallas_src>

<mosaic_0001>
module attributes {stable_mosaic.version = 11 : i64} {
  func.func @_fused_forward_kernel(%arg0: memref<8x128xf32, #tpu.memory_space<vmem>>, %arg1: memref<8x32xf32, #tpu.memory_space<vmem>>, %arg2: memref<8x32xf32, #tpu.memory_space<vmem>>, %arg3: memref<2x1x128xf32, #tpu.memory_space<vmem>>, %arg4: memref<2x128x256xbf16, #tpu.memory_space<vmem>>, %arg5: memref<2x128x128xbf16, #tpu.memory_space<vmem>>, %arg6: memref<2x1x128xf32, #tpu.memory_space<vmem>>, %arg7: memref<2x128x512xbf16, #tpu.memory_space<vmem>>, %arg8: memref<2x256x128xbf16, #tpu.memory_space<vmem>>, %arg9: memref<1x128xf32, #tpu.memory_space<vmem>>, %arg10: memref<8x128xf32, #tpu.memory_space<vmem>>) attributes {dimension_semantics = [], scalar_prefetch = 0 : i64, scratch_operands = 0 : i64, tpu.core_type = #tpu.core_type<tc>} {
    %c0 = arith.constant 0 : index
    %c0_0 = arith.constant 0 : index
    %0 = vector.load %arg0[%c0, %c0_0] : memref<8x128xf32, #tpu.memory_space<vmem>>, vector<8x128xf32>
    %c0_1 = arith.constant 0 : index
    %c0_2 = arith.constant 0 : index
    %1 = vector.load %arg1[%c0_1, %c0_2] : memref<8x32xf32, #tpu.memory_space<vmem>>, vector<8x32xf32>
    %c0_3 = arith.constant 0 : index
    %c0_4 = arith.constant 0 : index
    %2 = vector.load %arg2[%c0_3, %c0_4] : memref<8x32xf32, #tpu.memory_space<vmem>>, vector<8x32xf32>
    %3 = tpu.iota {dimensions = array<i32: 0>} : vector<8x8xi32>
    %4 = tpu.iota {dimensions = array<i32: 1>} : vector<8x8xi32>
    %5 = arith.cmpi sle, %4, %3 : vector<8x8xi32>
    %c0_5 = arith.constant 0 : index
    %c0_6 = arith.constant 0 : index
    %c0_7 = arith.constant 0 : index
    %6 = vector.load %arg3[%c0_5, %c0_6, %c0_7] : memref<2x1x128xf32, #tpu.memory_space<vmem>>, vector<1x1x128xf32>
    %7 = vector.shape_cast %6 : vector<1x1x128xf32> to vector<1x128xf32>
    %8 = arith.mulf %0, %0 : vector<8x128xf32>
    %cst = arith.constant dense<0.000000e+00> : vector<8xf32>
    %9 = vector.multi_reduction <add>, %8, %cst [1] : vector<8x128xf32> to vector<8xf32>
    %10 = vector.shape_cast %9 : vector<8xf32> to vector<8x1xf32>
    %cst_8 = arith.constant 1.280000e+02 : f32
    %11 = vector.broadcast %cst_8 : f32 to vector<8x1xf32>
    %12 = arith.divf %10, %11 : vector<8x1xf32>
    %cst_9 = arith.constant 9.99999997E-7 : f32
    %13 = vector.broadcast %cst_9 : f32 to vector<8x1xf32>
    %14 = arith.addf %12, %13 : vector<8x1xf32>
    %15 = math.rsqrt %14 : vector<8x1xf32>
    %16 = vector.broadcast %15 : vector<8x1xf32> to vector<8x128xf32>
    %17 = arith.mulf %0, %16 : vector<8x128xf32>
    %18 = vector.broadcast %7 : vector<1x128xf32> to vector<8x128xf32>
    %19 = arith.mulf %17, %18 : vector<8x128xf32>
    %20 = arith.truncf %19 : vector<8x128xf32> to vector<8x128xbf16>
    %c0_10 = arith.constant 0 : index
    %c0_11 = arith.constant 0 : index
    %c0_12 = arith.constant 0 : index
    %21 = vector.load %arg4[%c0_10, %c0_11, %c0_12] : memref<2x128x256xbf16, #tpu.memory_space<vmem>>, vector<1x128x256xbf16>
    %22 = vector.shape_cast %21 : vector<1x128x256xbf16> to vector<128x256xbf16>
    %cst_13 = arith.constant dense<0.000000e+00> : vector<8x256xf32>
    %23 = tpu.matmul %20, %22, %cst_13 {dimension_numbers = #tpu.dot_dimension_numbers<[1], [0], [0], [1], [0, 0, 1, 1], [], []>} : vector<8x128xbf16>, vector<128x256xbf16>, vector<8x256xf32> -> vector<8x256xf32>
    %24 = vector.extract_strided_slice %23 {offsets = [0, 0], sizes = [8, 32], strides = [1, 1]} : vector<8x256xf32> to vector<8x32xf32>
    %25 = vector.extract_strided_slice %24 {offsets = [0, 16], sizes = [8, 16], strides = [1, 1]} : vector<8x32xf32> to vector<8x16xf32>
    %cst_14 = arith.constant 0.000000e+00 : f32
    %26 = vector.broadcast %cst_14 : f32 to vector<8x16xf32>
    %27 = arith.subf %26, %25 : vector<8x16xf32>
    %28 = vector.extract_strided_slice %24 {offsets = [0, 0], sizes = [8, 16], strides = [1, 1]} : vector<8x32xf32> to vector<8x16xf32>
    %29 = tpu.concatenate %27, %28 in 1 : vector<8x16xf32>, vector<8x16xf32> -> vector<8x32xf32>
    %30 = arith.mulf %24, %1 : vector<8x32xf32>
    %31 = arith.mulf %29, %2 : vector<8x32xf32>
    %32 = arith.addf %30, %31 : vector<8x32xf32>
    %33 = vector.extract_strided_slice %23 {offsets = [0, 32], sizes = [8, 32], strides = [1, 1]} : vector<8x256xf32> to vector<8x32xf32>
    %34 = vector.extract_strided_slice %33 {offsets = [0, 16], sizes = [8, 16], strides = [1, 1]} : vector<8x32xf32> to vector<8x16xf32>
    %cst_15 = arith.constant 0.000000e+00 : f32
    %35 = vector.broadcast %cst_15 : f32 to vector<8x16xf32>
    %36 = arith.subf %35, %34 : vector<8x16xf32>
    %37 = vector.extract_strided_slice %33 {offsets = [0, 0], sizes = [8, 16], strides = [1, 1]} : vector<8x32xf32> to vector<8x16xf32>
    %38 = tpu.concatenate %36, %37 in 1 : vector<8x16xf32>, vector<8x16xf32> -> vector<8x32xf32>
    %39 = arith.mulf %33, %1 : vector<8x32xf32>
    %40 = arith.mulf %38, %2 : vector<8x32xf32>
    %41 = arith.addf %39, %40 : vector<8x32xf32>
    %42 = vector.extract_strided_slice %23 {offsets = [0, 64], sizes = [8, 32], strides = [1, 1]} : vector<8x256xf32> to vector<8x32xf32>
    %43 = vector.extract_strided_slice %42 {offsets = [0, 16], sizes = [8, 16], strides = [1, 1]} : vector<8x32xf32> to vector<8x16xf32>
    %cst_16 = arith.constant 0.000000e+00 : f32
    %44 = vector.broadcast %cst_16 : f32 to vector<8x16xf32>
    %45 = arith.subf %44, %43 : vector<8x16xf32>
    %46 = vector.extract_strided_slice %42 {offsets = [0, 0], sizes = [8, 16], strides = [1, 1]} : vector<8x32xf32> to vector<8x16xf32>
    %47 = tpu.concatenate %45, %46 in 1 : vector<8x16xf32>, vector<8x16xf32> -> vector<8x32xf32>
    %48 = arith.mulf %42, %1 : vector<8x32xf32>
    %49 = arith.mulf %47, %2 : vector<8x32xf32>
    %50 = arith.addf %48, %49 : vector<8x32xf32>
    %51 = vector.extract_strided_slice %23 {offsets = [0, 96], sizes = [8, 32], strides = [1, 1]} : vector<8x256xf32> to vector<8x32xf32>
    %52 = vector.extract_strided_slice %51 {offsets = [0, 16], sizes = [8, 16], strides = [1, 1]} : vector<8x32xf32> to vector<8x16xf32>
    %cst_17 = arith.constant 0.000000e+00 : f32
    %53 = vector.broadcast %cst_17 : f32 to vector<8x16xf32>
    %54 = arith.subf %53, %52 : vector<8x16xf32>
    %55 = vector.extract_strided_slice %51 {offsets = [0, 0], sizes = [8, 16], strides = [1, 1]} : vector<8x32xf32> to vector<8x16xf32>
    %56 = tpu.concatenate %54, %55 in 1 : vector<8x16xf32>, vector<8x16xf32> -> vector<8x32xf32>
    %57 = arith.mulf %51, %1 : vector<8x32xf32>
    %58 = arith.mulf %56, %2 : vector<8x32xf32>
    %59 = arith.addf %57, %58 : vector<8x32xf32>
    %60 = vector.extract_strided_slice %23 {offsets = [0, 128], sizes = [8, 32], strides = [1, 1]} : vector<8x256xf32> to vector<8x32xf32>
    %61 = vector.extract_strided_slice %60 {offsets = [0, 16], sizes = [8, 16], strides = [1, 1]} : vector<8x32xf32> to vector<8x16xf32>
    %cst_18 = arith.constant 0.000000e+00 : f32
    %62 = vector.broadcast %cst_18 : f32 to vector<8x16xf32>
    %63 = arith.subf %62, %61 : vector<8x16xf32>
    %64 = vector.extract_strided_slice %60 {offsets = [0, 0], sizes = [8, 16], strides = [1, 1]} : vector<8x32xf32> to vector<8x16xf32>
    %65 = tpu.concatenate %63, %64 in 1 : vector<8x16xf32>, vector<8x16xf32> -> vector<8x32xf32>
    %66 = arith.mulf %60, %1 : vector<8x32xf32>
    %67 = arith.mulf %65, %2 : vector<8x32xf32>
    %68 = arith.addf %66, %67 : vector<8x32xf32>
    %69 = vector.extract_strided_slice %23 {offsets = [0, 160], sizes = [8, 32], strides = [1, 1]} : vector<8x256xf32> to vector<8x32xf32>
    %70 = vector.extract_strided_slice %69 {offsets = [0, 16], sizes = [8, 16], strides = [1, 1]} : vector<8x32xf32> to vector<8x16xf32>
    %cst_19 = arith.constant 0.000000e+00 : f32
    %71 = vector.broadcast %cst_19 : f32 to vector<8x16xf32>
    %72 = arith.subf %71, %70 : vector<8x16xf32>
    %73 = vector.extract_strided_slice %69 {offsets = [0, 0], sizes = [8, 16], strides = [1, 1]} : vector<8x32xf32> to vector<8x16xf32>
    %74 = tpu.concatenate %72, %73 in 1 : vector<8x16xf32>, vector<8x16xf32> -> vector<8x32xf32>
    %75 = arith.mulf %69, %1 : vector<8x32xf32>
    %76 = arith.mulf %74, %2 : vector<8x32xf32>
    %77 = arith.addf %75, %76 : vector<8x32xf32>
    %78 = vector.extract_strided_slice %23 {offsets = [0, 192], sizes = [8, 32], strides = [1, 1]} : vector<8x256xf32> to vector<8x32xf32>
    %79 = vector.extract_strided_slice %23 {offsets = [0, 224], sizes = [8, 32], strides = [1, 1]} : vector<8x256xf32> to vector<8x32xf32>
    %cst_20 = arith.constant dense<0.000000e+00> : vector<8x8xf32>
    %80 = tpu.matmul %32, %68, %cst_20 {dimension_numbers = #tpu.dot_dimension_numbers<[1], [1], [0], [0], [0, 0, 1, 0], [], []>} : vector<8x32xf32>, vector<8x32xf32>, vector<8x8xf32> -> vector<8x8xf32>
    %cst_21 = arith.constant 0.176776692 : f32
    %81 = vector.broadcast %cst_21 : f32 to vector<8x8xf32>
    %82 = arith.mulf %80, %81 : vector<8x8xf32>
    %cst_22 = arith.constant -1.000000e+30 : f32
    %83 = vector.broadcast %cst_22 : f32 to vector<8x8xf32>
    %84 = arith.select %5, %82, %83 : vector<8x8xi1>, vector<8x8xf32>
    %cst_23 = arith.constant dense<0xFF800000> : vector<8xf32>
    %85 = vector.multi_reduction <maximumf>, %84, %cst_23 [1] : vector<8x8xf32> to vector<8xf32>
    %86 = vector.shape_cast %85 : vector<8xf32> to vector<8x1xf32>
    %87 = vector.broadcast %86 : vector<8x1xf32> to vector<8x8xf32>
    %88 = arith.subf %84, %87 : vector<8x8xf32>
    %89 = math.exp %88 : vector<8x8xf32>
    %cst_24 = arith.constant dense<0.000000e+00> : vector<8xf32>
    %90 = vector.multi_reduction <add>, %89, %cst_24 [1] : vector<8x8xf32> to vector<8xf32>
    %91 = vector.shape_cast %90 : vector<8xf32> to vector<8x1xf32>
    %92 = tpu.reciprocal %91 {approx = true} : vector<8x1xf32> -> vector<8x1xf32>
    %93 = vector.broadcast %92 : vector<8x1xf32> to vector<8x8xf32>
    %94 = arith.mulf %89, %93 : vector<8x8xf32>
    %cst_25 = arith.constant dense<0.000000e+00> : vector<8x32xf32>
    %95 = tpu.matmul %94, %78, %cst_25 {dimension_numbers = #tpu.dot_dimension_numbers<[1], [0], [0], [1], [0, 0, 1, 1], [], []>} : vector<8x8xf32>, vector<8x32xf32>, vector<8x32xf32> -> vector<8x32xf32>
    %cst_26 = arith.constant dense<0.000000e+00> : vector<8x8xf32>
    %96 = tpu.matmul %41, %68, %cst_26 {dimension_numbers = #tpu.dot_dimension_numbers<[1], [1], [0], [0], [0, 0, 1, 0], [], []>} : vector<8x32xf32>, vector<8x32xf32>, vector<8x8xf32> -> vector<8x8xf32>
    %cst_27 = arith.constant 0.176776692 : f32
    %97 = vector.broadcast %cst_27 : f32 to vector<8x8xf32>
    %98 = arith.mulf %96, %97 : vector<8x8xf32>
    %cst_28 = arith.constant -1.000000e+30 : f32
    %99 = vector.broadcast %cst_28 : f32 to vector<8x8xf32>
    %100 = arith.select %5, %98, %99 : vector<8x8xi1>, vector<8x8xf32>
    %cst_29 = arith.constant dense<0xFF800000> : vector<8xf32>
    %101 = vector.multi_reduction <maximumf>, %100, %cst_29 [1] : vector<8x8xf32> to vector<8xf32>
    %102 = vector.shape_cast %101 : vector<8xf32> to vector<8x1xf32>
    %103 = vector.broadcast %102 : vector<8x1xf32> to vector<8x8xf32>
    %104 = arith.subf %100, %103 : vector<8x8xf32>
    %105 = math.exp %104 : vector<8x8xf32>
    %cst_30 = arith.constant dense<0.000000e+00> : vector<8xf32>
    %106 = vector.multi_reduction <add>, %105, %cst_30 [1] : vector<8x8xf32> to vector<8xf32>
    %107 = vector.shape_cast %106 : vector<8xf32> to vector<8x1xf32>
    %108 = tpu.reciprocal %107 {approx = true} : vector<8x1xf32> -> vector<8x1xf32>
    %109 = vector.broadcast %108 : vector<8x1xf32> to vector<8x8xf32>
    %110 = arith.mulf %105, %109 : vector<8x8xf32>
    %cst_31 = arith.constant dense<0.000000e+00> : vector<8x32xf32>
    %111 = tpu.matmul %110, %78, %cst_31 {dimension_numbers = #tpu.dot_dimension_numbers<[1], [0], [0], [1], [0, 0, 1, 1], [], []>} : vector<8x8xf32>, vector<8x32xf32>, vector<8x32xf32> -> vector<8x32xf32>
    %cst_32 = arith.constant dense<0.000000e+00> : vector<8x8xf32>
    %112 = tpu.matmul %50, %77, %cst_32 {dimension_numbers = #tpu.dot_dimension_numbers<[1], [1], [0], [0], [0, 0, 1, 0], [], []>} : vector<8x32xf32>, vector<8x32xf32>, vector<8x8xf32> -> vector<8x8xf32>
    %cst_33 = arith.constant 0.176776692 : f32
    %113 = vector.broadcast %cst_33 : f32 to vector<8x8xf32>
    %114 = arith.mulf %112, %113 : vector<8x8xf32>
    %cst_34 = arith.constant -1.000000e+30 : f32
    %115 = vector.broadcast %cst_34 : f32 to vector<8x8xf32>
    %116 = arith.select %5, %114, %115 : vector<8x8xi1>, vector<8x8xf32>
    %cst_35 = arith.constant dense<0xFF800000> : vector<8xf32>
    %117 = vector.multi_reduction <maximumf>, %116, %cst_35 [1] : vector<8x8xf32> to vector<8xf32>
    %118 = vector.shape_cast %117 : vector<8xf32> to vector<8x1xf32>
    %119 = vector.broadcast %118 : vector<8x1xf32> to vector<8x8xf32>
    %120 = arith.subf %116, %119 : vector<8x8xf32>
    %121 = math.exp %120 : vector<8x8xf32>
    %cst_36 = arith.constant dense<0.000000e+00> : vector<8xf32>
    %122 = vector.multi_reduction <add>, %121, %cst_36 [1] : vector<8x8xf32> to vector<8xf32>
    %123 = vector.shape_cast %122 : vector<8xf32> to vector<8x1xf32>
    %124 = tpu.reciprocal %123 {approx = true} : vector<8x1xf32> -> vector<8x1xf32>
    %125 = vector.broadcast %124 : vector<8x1xf32> to vector<8x8xf32>
    %126 = arith.mulf %121, %125 : vector<8x8xf32>
    %cst_37 = arith.constant dense<0.000000e+00> : vector<8x32xf32>
    %127 = tpu.matmul %126, %79, %cst_37 {dimension_numbers = #tpu.dot_dimension_numbers<[1], [0], [0], [1], [0, 0, 1, 1], [], []>} : vector<8x8xf32>, vector<8x32xf32>, vector<8x32xf32> -> vector<8x32xf32>
    %cst_38 = arith.constant dense<0.000000e+00> : vector<8x8xf32>
    %128 = tpu.matmul %59, %77, %cst_38 {dimension_numbers = #tpu.dot_dimension_numbers<[1], [1], [0], [0], [0, 0, 1, 0], [], []>} : vector<8x32xf32>, vector<8x32xf32>, vector<8x8xf32> -> vector<8x8xf32>
    %cst_39 = arith.constant 0.176776692 : f32
    %129 = vector.broadcast %cst_39 : f32 to vector<8x8xf32>
    %130 = arith.mulf %128, %129 : vector<8x8xf32>
    %cst_40 = arith.constant -1.000000e+30 : f32
    %131 = vector.broadcast %cst_40 : f32 to vector<8x8xf32>
    %132 = arith.select %5, %130, %131 : vector<8x8xi1>, vector<8x8xf32>
    %cst_41 = arith.constant dense<0xFF800000> : vector<8xf32>
    %133 = vector.multi_reduction <maximumf>, %132, %cst_41 [1] : vector<8x8xf32> to vector<8xf32>
    %134 = vector.shape_cast %133 : vector<8xf32> to vector<8x1xf32>
    %135 = vector.broadcast %134 : vector<8x1xf32> to vector<8x8xf32>
    %136 = arith.subf %132, %135 : vector<8x8xf32>
    %137 = math.exp %136 : vector<8x8xf32>
    %cst_42 = arith.constant dense<0.000000e+00> : vector<8xf32>
    %138 = vector.multi_reduction <add>, %137, %cst_42 [1] : vector<8x8xf32> to vector<8xf32>
    %139 = vector.shape_cast %138 : vector<8xf32> to vector<8x1xf32>
    %140 = tpu.reciprocal %139 {approx = true} : vector<8x1xf32> -> vector<8x1xf32>
    %141 = vector.broadcast %140 : vector<8x1xf32> to vector<8x8xf32>
    %142 = arith.mulf %137, %141 : vector<8x8xf32>
    %cst_43 = arith.constant dense<0.000000e+00> : vector<8x32xf32>
    %143 = tpu.matmul %142, %79, %cst_43 {dimension_numbers = #tpu.dot_dimension_numbers<[1], [0], [0], [1], [0, 0, 1, 1], [], []>} : vector<8x8xf32>, vector<8x32xf32>, vector<8x32xf32> -> vector<8x32xf32>
    %144 = tpu.concatenate %95, %111, %127, %143 in 1 : vector<8x32xf32>, vector<8x32xf32>, vector<8x32xf32>, vector<8x32xf32> -> vector<8x128xf32>
    %145 = arith.truncf %144 : vector<8x128xf32> to vector<8x128xbf16>
    %c0_44 = arith.constant 0 : index
    %c0_45 = arith.constant 0 : index
    %c0_46 = arith.constant 0 : index
    %146 = vector.load %arg5[%c0_44, %c0_45, %c0_46] : memref<2x128x128xbf16, #tpu.memory_space<vmem>>, vector<1x128x128xbf16>
    %147 = vector.shape_cast %146 : vector<1x128x128xbf16> to vector<128x128xbf16>
    %cst_47 = arith.constant dense<0.000000e+00> : vector<8x128xf32>
    %148 = tpu.matmul %145, %147, %cst_47 {dimension_numbers = #tpu.dot_dimension_numbers<[1], [0], [0], [1], [0, 0, 1, 1], [], []>} : vector<8x128xbf16>, vector<128x128xbf16>, vector<8x128xf32> -> vector<8x128xf32>
    %149 = arith.addf %0, %148 : vector<8x128xf32>
    %c0_48 = arith.constant 0 : index
    %c0_49 = arith.constant 0 : index
    %c0_50 = arith.constant 0 : index
    %150 = vector.load %arg6[%c0_48, %c0_49, %c0_50] : memref<2x1x128xf32, #tpu.memory_space<vmem>>, vector<1x1x128xf32>
    %151 = vector.shape_cast %150 : vector<1x1x128xf32> to vector<1x128xf32>
    %152 = arith.mulf %149, %149 : vector<8x128xf32>
    %cst_51 = arith.constant dense<0.000000e+00> : vector<8xf32>
    %153 = vector.multi_reduction <add>, %152, %cst_51 [1] : vector<8x128xf32> to vector<8xf32>
    %154 = vector.shape_cast %153 : vector<8xf32> to vector<8x1xf32>
    %cst_52 = arith.constant 1.280000e+02 : f32
    %155 = vector.broadcast %cst_52 : f32 to vector<8x1xf32>
    %156 = arith.divf %154, %155 : vector<8x1xf32>
    %cst_53 = arith.constant 9.99999997E-7 : f32
    %157 = vector.broadcast %cst_53 : f32 to vector<8x1xf32>
    %158 = arith.addf %156, %157 : vector<8x1xf32>
    %159 = math.rsqrt %158 : vector<8x1xf32>
    %160 = vector.broadcast %159 : vector<8x1xf32> to vector<8x128xf32>
    %161 = arith.mulf %149, %160 : vector<8x128xf32>
    %162 = vector.broadcast %151 : vector<1x128xf32> to vector<8x128xf32>
    %163 = arith.mulf %161, %162 : vector<8x128xf32>
    %164 = arith.truncf %163 : vector<8x128xf32> to vector<8x128xbf16>
    %c0_54 = arith.constant 0 : index
    %c0_55 = arith.constant 0 : index
    %c0_56 = arith.constant 0 : index
    %165 = vector.load %arg7[%c0_54, %c0_55, %c0_56] : memref<2x128x512xbf16, #tpu.memory_space<vmem>>, vector<1x128x512xbf16>
    %166 = vector.shape_cast %165 : vector<1x128x512xbf16> to vector<128x512xbf16>
    %cst_57 = arith.constant dense<0.000000e+00> : vector<8x512xf32>
    %167 = tpu.matmul %164, %166, %cst_57 {dimension_numbers = #tpu.dot_dimension_numbers<[1], [0], [0], [1], [0, 0, 1, 1], [], []>} : vector<8x128xbf16>, vector<128x512xbf16>, vector<8x512xf32> -> vector<8x512xf32>
    %168 = vector.extract_strided_slice %167 {offsets = [0, 0], sizes = [8, 256], strides = [1, 1]} : vector<8x512xf32> to vector<8x256xf32>
    %169 = vector.extract_strided_slice %167 {offsets = [0, 256], sizes = [8, 256], strides = [1, 1]} : vector<8x512xf32> to vector<8x256xf32>
    %170 = arith.negf %168 : vector<8x256xf32>
    %171 = math.exp %170 : vector<8x256xf32>
    %cst_58 = arith.constant 1.000000e+00 : f32
    %172 = vector.broadcast %cst_58 : f32 to vector<8x256xf32>
    %173 = arith.addf %172, %171 : vector<8x256xf32>
    %174 = arith.divf %172, %173 : vector<8x256xf32>
    %175 = arith.mulf %168, %174 : vector<8x256xf32>
    %176 = arith.mulf %175, %169 : vector<8x256xf32>
    %177 = arith.truncf %176 : vector<8x256xf32> to vector<8x256xbf16>
    %c0_59 = arith.constant 0 : index
    %c0_60 = arith.constant 0 : index
    %c0_61 = arith.constant 0 : index
    %178 = vector.load %arg8[%c0_59, %c0_60, %c0_61] : memref<2x256x128xbf16, #tpu.memory_space<vmem>>, vector<1x256x128xbf16>
    %179 = vector.shape_cast %178 : vector<1x256x128xbf16> to vector<256x128xbf16>
    %cst_62 = arith.constant dense<0.000000e+00> : vector<8x128xf32>
    %180 = tpu.matmul %177, %179, %cst_62 {dimension_numbers = #tpu.dot_dimension_numbers<[1], [0], [0], [1], [0, 0, 1, 1], [], []>} : vector<8x256xbf16>, vector<256x128xbf16>, vector<8x128xf32> -> vector<8x128xf32>
    %181 = arith.addf %149, %180 : vector<8x128xf32>
    %c1 = arith.constant 1 : index
    %c0_63 = arith.constant 0 : index
    %c0_64 = arith.constant 0 : index
    %182 = vector.load %arg3[%c1, %c0_63, %c0_64] : memref<2x1x128xf32, #tpu.memory_space<vmem>>, vector<1x1x128xf32>
    %183 = vector.shape_cast %182 : vector<1x1x128xf32> to vector<1x128xf32>
    %184 = arith.mulf %181, %181 : vector<8x128xf32>
    %cst_65 = arith.constant dense<0.000000e+00> : vector<8xf32>
    %185 = vector.multi_reduction <add>, %184, %cst_65 [1] : vector<8x128xf32> to vector<8xf32>
    %186 = vector.shape_cast %185 : vector<8xf32> to vector<8x1xf32>
    %cst_66 = arith.constant 1.280000e+02 : f32
    %187 = vector.broadcast %cst_66 : f32 to vector<8x1xf32>
    %188 = arith.divf %186, %187 : vector<8x1xf32>
    %cst_67 = arith.constant 9.99999997E-7 : f32
    %189 = vector.broadcast %cst_67 : f32 to vector<8x1xf32>
    %190 = arith.addf %188, %189 : vector<8x1xf32>
    %191 = math.rsqrt %190 : vector<8x1xf32>
    %192 = vector.broadcast %191 : vector<8x1xf32> to vector<8x128xf32>
    %193 = arith.mulf %181, %192 : vector<8x128xf32>
    %194 = vector.broadcast %183 : vector<1x128xf32> to vector<8x128xf32>
    %195 = arith.mulf %193, %194 : vector<8x128xf32>
    %196 = arith.truncf %195 : vector<8x128xf32> to vector<8x128xbf16>
    %c1_68 = arith.constant 1 : index
    %c0_69 = arith.constant 0 : index
    %c0_70 = arith.constant 0 : index
    %197 = vector.load %arg4[%c1_68, %c0_69, %c0_70] : memref<2x128x256xbf16, #tpu.memory_space<vmem>>, vector<1x128x256xbf16>
    %198 = vector.shape_cast %197 : vector<1x128x256xbf16> to vector<128x256xbf16>
    %cst_71 = arith.constant dense<0.000000e+00> : vector<8x256xf32>
    %199 = tpu.matmul %196, %198, %cst_71 {dimension_numbers = #tpu.dot_dimension_numbers<[1], [0], [0], [1], [0, 0, 1, 1], [], []>} : vector<8x128xbf16>, vector<128x256xbf16>, vector<8x256xf32> -> vector<8x256xf32>
    %200 = vector.extract_strided_slice %199 {offsets = [0, 0], sizes = [8, 32], strides = [1, 1]} : vector<8x256xf32> to vector<8x32xf32>
    %201 = vector.extract_strided_slice %200 {offsets = [0, 16], sizes = [8, 16], strides = [1, 1]} : vector<8x32xf32> to vector<8x16xf32>
    %cst_72 = arith.constant 0.000000e+00 : f32
    %202 = vector.broadcast %cst_72 : f32 to vector<8x16xf32>
    %203 = arith.subf %202, %201 : vector<8x16xf32>
    %204 = vector.extract_strided_slice %200 {offsets = [0, 0], sizes = [8, 16], strides = [1, 1]} : vector<8x32xf32> to vector<8x16xf32>
    %205 = tpu.concatenate %203, %204 in 1 : vector<8x16xf32>, vector<8x16xf32> -> vector<8x32xf32>
    %206 = arith.mulf %200, %1 : vector<8x32xf32>
    %207 = arith.mulf %205, %2 : vector<8x32xf32>
    %208 = arith.addf %206, %207 : vector<8x32xf32>
    %209 = vector.extract_strided_slice %199 {offsets = [0, 32], sizes = [8, 32], strides = [1, 1]} : vector<8x256xf32> to vector<8x32xf32>
    %210 = vector.extract_strided_slice %209 {offsets = [0, 16], sizes = [8, 16], strides = [1, 1]} : vector<8x32xf32> to vector<8x16xf32>
    %cst_73 = arith.constant 0.000000e+00 : f32
    %211 = vector.broadcast %cst_73 : f32 to vector<8x16xf32>
    %212 = arith.subf %211, %210 : vector<8x16xf32>
    %213 = vector.extract_strided_slice %209 {offsets = [0, 0], sizes = [8, 16], strides = [1, 1]} : vector<8x32xf32> to vector<8x16xf32>
    %214 = tpu.concatenate %212, %213 in 1 : vector<8x16xf32>, vector<8x16xf32> -> vector<8x32xf32>
    %215 = arith.mulf %209, %1 : vector<8x32xf32>
    %216 = arith.mulf %214, %2 : vector<8x32xf32>
    %217 = arith.addf %215, %216 : vector<8x32xf32>
    %218 = vector.extract_strided_slice %199 {offsets = [0, 64], sizes = [8, 32], strides = [1, 1]} : vector<8x256xf32> to vector<8x32xf32>
    %219 = vector.extract_strided_slice %218 {offsets = [0, 16], sizes = [8, 16], strides = [1, 1]} : vector<8x32xf32> to vector<8x16xf32>
    %cst_74 = arith.constant 0.000000e+00 : f32
    %220 = vector.broadcast %cst_74 : f32 to vector<8x16xf32>
    %221 = arith.subf %220, %219 : vector<8x16xf32>
    %222 = vector.extract_strided_slice %218 {offsets = [0, 0], sizes = [8, 16], strides = [1, 1]} : vector<8x32xf32> to vector<8x16xf32>
    %223 = tpu.concatenate %221, %222 in 1 : vector<8x16xf32>, vector<8x16xf32> -> vector<8x32xf32>
    %224 = arith.mulf %218, %1 : vector<8x32xf32>
    %225 = arith.mulf %223, %2 : vector<8x32xf32>
    %226 = arith.addf %224, %225 : vector<8x32xf32>
    %227 = vector.extract_strided_slice %199 {offsets = [0, 96], sizes = [8, 32], strides = [1, 1]} : vector<8x256xf32> to vector<8x32xf32>
    %228 = vector.extract_strided_slice %227 {offsets = [0, 16], sizes = [8, 16], strides = [1, 1]} : vector<8x32xf32> to vector<8x16xf32>
    %cst_75 = arith.constant 0.000000e+00 : f32
    %229 = vector.broadcast %cst_75 : f32 to vector<8x16xf32>
    %230 = arith.subf %229, %228 : vector<8x16xf32>
    %231 = vector.extract_strided_slice %227 {offsets = [0, 0], sizes = [8, 16], strides = [1, 1]} : vector<8x32xf32> to vector<8x16xf32>
    %232 = tpu.concatenate %230, %231 in 1 : vector<8x16xf32>, vector<8x16xf32> -> vector<8x32xf32>
    %233 = arith.mulf %227, %1 : vector<8x32xf32>
    %234 = arith.mulf %232, %2 : vector<8x32xf32>
    %235 = arith.addf %233, %234 : vector<8x32xf32>
    %236 = vector.extract_strided_slice %199 {offsets = [0, 128], sizes = [8, 32], strides = [1, 1]} : vector<8x256xf32> to vector<8x32xf32>
    %237 = vector.extract_strided_slice %236 {offsets = [0, 16], sizes = [8, 16], strides = [1, 1]} : vector<8x32xf32> to vector<8x16xf32>
    %cst_76 = arith.constant 0.000000e+00 : f32
    %238 = vector.broadcast %cst_76 : f32 to vector<8x16xf32>
    %239 = arith.subf %238, %237 : vector<8x16xf32>
    %240 = vector.extract_strided_slice %236 {offsets = [0, 0], sizes = [8, 16], strides = [1, 1]} : vector<8x32xf32> to vector<8x16xf32>
    %241 = tpu.concatenate %239, %240 in 1 : vector<8x16xf32>, vector<8x16xf32> -> vector<8x32xf32>
    %242 = arith.mulf %236, %1 : vector<8x32xf32>
    %243 = arith.mulf %241, %2 : vector<8x32xf32>
    %244 = arith.addf %242, %243 : vector<8x32xf32>
    %245 = vector.extract_strided_slice %199 {offsets = [0, 160], sizes = [8, 32], strides = [1, 1]} : vector<8x256xf32> to vector<8x32xf32>
    %246 = vector.extract_strided_slice %245 {offsets = [0, 16], sizes = [8, 16], strides = [1, 1]} : vector<8x32xf32> to vector<8x16xf32>
    %cst_77 = arith.constant 0.000000e+00 : f32
    %247 = vector.broadcast %cst_77 : f32 to vector<8x16xf32>
    %248 = arith.subf %247, %246 : vector<8x16xf32>
    %249 = vector.extract_strided_slice %245 {offsets = [0, 0], sizes = [8, 16], strides = [1, 1]} : vector<8x32xf32> to vector<8x16xf32>
    %250 = tpu.concatenate %248, %249 in 1 : vector<8x16xf32>, vector<8x16xf32> -> vector<8x32xf32>
    %251 = arith.mulf %245, %1 : vector<8x32xf32>
    %252 = arith.mulf %250, %2 : vector<8x32xf32>
    %253 = arith.addf %251, %252 : vector<8x32xf32>
    %254 = vector.extract_strided_slice %199 {offsets = [0, 192], sizes = [8, 32], strides = [1, 1]} : vector<8x256xf32> to vector<8x32xf32>
    %255 = vector.extract_strided_slice %199 {offsets = [0, 224], sizes = [8, 32], strides = [1, 1]} : vector<8x256xf32> to vector<8x32xf32>
    %cst_78 = arith.constant dense<0.000000e+00> : vector<8x8xf32>
    %256 = tpu.matmul %208, %244, %cst_78 {dimension_numbers = #tpu.dot_dimension_numbers<[1], [1], [0], [0], [0, 0, 1, 0], [], []>} : vector<8x32xf32>, vector<8x32xf32>, vector<8x8xf32> -> vector<8x8xf32>
    %cst_79 = arith.constant 0.176776692 : f32
    %257 = vector.broadcast %cst_79 : f32 to vector<8x8xf32>
    %258 = arith.mulf %256, %257 : vector<8x8xf32>
    %cst_80 = arith.constant -1.000000e+30 : f32
    %259 = vector.broadcast %cst_80 : f32 to vector<8x8xf32>
    %260 = arith.select %5, %258, %259 : vector<8x8xi1>, vector<8x8xf32>
    %cst_81 = arith.constant dense<0xFF800000> : vector<8xf32>
    %261 = vector.multi_reduction <maximumf>, %260, %cst_81 [1] : vector<8x8xf32> to vector<8xf32>
    %262 = vector.shape_cast %261 : vector<8xf32> to vector<8x1xf32>
    %263 = vector.broadcast %262 : vector<8x1xf32> to vector<8x8xf32>
    %264 = arith.subf %260, %263 : vector<8x8xf32>
    %265 = math.exp %264 : vector<8x8xf32>
    %cst_82 = arith.constant dense<0.000000e+00> : vector<8xf32>
    %266 = vector.multi_reduction <add>, %265, %cst_82 [1] : vector<8x8xf32> to vector<8xf32>
    %267 = vector.shape_cast %266 : vector<8xf32> to vector<8x1xf32>
    %268 = tpu.reciprocal %267 {approx = true} : vector<8x1xf32> -> vector<8x1xf32>
    %269 = vector.broadcast %268 : vector<8x1xf32> to vector<8x8xf32>
    %270 = arith.mulf %265, %269 : vector<8x8xf32>
    %cst_83 = arith.constant dense<0.000000e+00> : vector<8x32xf32>
    %271 = tpu.matmul %270, %254, %cst_83 {dimension_numbers = #tpu.dot_dimension_numbers<[1], [0], [0], [1], [0, 0, 1, 1], [], []>} : vector<8x8xf32>, vector<8x32xf32>, vector<8x32xf32> -> vector<8x32xf32>
    %cst_84 = arith.constant dense<0.000000e+00> : vector<8x8xf32>
    %272 = tpu.matmul %217, %244, %cst_84 {dimension_numbers = #tpu.dot_dimension_numbers<[1], [1], [0], [0], [0, 0, 1, 0], [], []>} : vector<8x32xf32>, vector<8x32xf32>, vector<8x8xf32> -> vector<8x8xf32>
    %cst_85 = arith.constant 0.176776692 : f32
    %273 = vector.broadcast %cst_85 : f32 to vector<8x8xf32>
    %274 = arith.mulf %272, %273 : vector<8x8xf32>
    %cst_86 = arith.constant -1.000000e+30 : f32
    %275 = vector.broadcast %cst_86 : f32 to vector<8x8xf32>
    %276 = arith.select %5, %274, %275 : vector<8x8xi1>, vector<8x8xf32>
    %cst_87 = arith.constant dense<0xFF800000> : vector<8xf32>
    %277 = vector.multi_reduction <maximumf>, %276, %cst_87 [1] : vector<8x8xf32> to vector<8xf32>
    %278 = vector.shape_cast %277 : vector<8xf32> to vector<8x1xf32>
    %279 = vector.broadcast %278 : vector<8x1xf32> to vector<8x8xf32>
    %280 = arith.subf %276, %279 : vector<8x8xf32>
    %281 = math.exp %280 : vector<8x8xf32>
    %cst_88 = arith.constant dense<0.000000e+00> : vector<8xf32>
    %282 = vector.multi_reduction <add>, %281, %cst_88 [1] : vector<8x8xf32> to vector<8xf32>
    %283 = vector.shape_cast %282 : vector<8xf32> to vector<8x1xf32>
    %284 = tpu.reciprocal %283 {approx = true} : vector<8x1xf32> -> vector<8x1xf32>
    %285 = vector.broadcast %284 : vector<8x1xf32> to vector<8x8xf32>
    %286 = arith.mulf %281, %285 : vector<8x8xf32>
    %cst_89 = arith.constant dense<0.000000e+00> : vector<8x32xf32>
    %287 = tpu.matmul %286, %254, %cst_89 {dimension_numbers = #tpu.dot_dimension_numbers<[1], [0], [0], [1], [0, 0, 1, 1], [], []>} : vector<8x8xf32>, vector<8x32xf32>, vector<8x32xf32> -> vector<8x32xf32>
    %cst_90 = arith.constant dense<0.000000e+00> : vector<8x8xf32>
    %288 = tpu.matmul %226, %253, %cst_90 {dimension_numbers = #tpu.dot_dimension_numbers<[1], [1], [0], [0], [0, 0, 1, 0], [], []>} : vector<8x32xf32>, vector<8x32xf32>, vector<8x8xf32> -> vector<8x8xf32>
    %cst_91 = arith.constant 0.176776692 : f32
    %289 = vector.broadcast %cst_91 : f32 to vector<8x8xf32>
    %290 = arith.mulf %288, %289 : vector<8x8xf32>
    %cst_92 = arith.constant -1.000000e+30 : f32
    %291 = vector.broadcast %cst_92 : f32 to vector<8x8xf32>
    %292 = arith.select %5, %290, %291 : vector<8x8xi1>, vector<8x8xf32>
    %cst_93 = arith.constant dense<0xFF800000> : vector<8xf32>
    %293 = vector.multi_reduction <maximumf>, %292, %cst_93 [1] : vector<8x8xf32> to vector<8xf32>
    %294 = vector.shape_cast %293 : vector<8xf32> to vector<8x1xf32>
    %295 = vector.broadcast %294 : vector<8x1xf32> to vector<8x8xf32>
    %296 = arith.subf %292, %295 : vector<8x8xf32>
    %297 = math.exp %296 : vector<8x8xf32>
    %cst_94 = arith.constant dense<0.000000e+00> : vector<8xf32>
    %298 = vector.multi_reduction <add>, %297, %cst_94 [1] : vector<8x8xf32> to vector<8xf32>
    %299 = vector.shape_cast %298 : vector<8xf32> to vector<8x1xf32>
    %300 = tpu.reciprocal %299 {approx = true} : vector<8x1xf32> -> vector<8x1xf32>
    %301 = vector.broadcast %300 : vector<8x1xf32> to vector<8x8xf32>
    %302 = arith.mulf %297, %301 : vector<8x8xf32>
    %cst_95 = arith.constant dense<0.000000e+00> : vector<8x32xf32>
    %303 = tpu.matmul %302, %255, %cst_95 {dimension_numbers = #tpu.dot_dimension_numbers<[1], [0], [0], [1], [0, 0, 1, 1], [], []>} : vector<8x8xf32>, vector<8x32xf32>, vector<8x32xf32> -> vector<8x32xf32>
    %cst_96 = arith.constant dense<0.000000e+00> : vector<8x8xf32>
    %304 = tpu.matmul %235, %253, %cst_96 {dimension_numbers = #tpu.dot_dimension_numbers<[1], [1], [0], [0], [0, 0, 1, 0], [], []>} : vector<8x32xf32>, vector<8x32xf32>, vector<8x8xf32> -> vector<8x8xf32>
    %cst_97 = arith.constant 0.176776692 : f32
    %305 = vector.broadcast %cst_97 : f32 to vector<8x8xf32>
    %306 = arith.mulf %304, %305 : vector<8x8xf32>
    %cst_98 = arith.constant -1.000000e+30 : f32
    %307 = vector.broadcast %cst_98 : f32 to vector<8x8xf32>
    %308 = arith.select %5, %306, %307 : vector<8x8xi1>, vector<8x8xf32>
    %cst_99 = arith.constant dense<0xFF800000> : vector<8xf32>
    %309 = vector.multi_reduction <maximumf>, %308, %cst_99 [1] : vector<8x8xf32> to vector<8xf32>
    %310 = vector.shape_cast %309 : vector<8xf32> to vector<8x1xf32>
    %311 = vector.broadcast %310 : vector<8x1xf32> to vector<8x8xf32>
    %312 = arith.subf %308, %311 : vector<8x8xf32>
    %313 = math.exp %312 : vector<8x8xf32>
    %cst_100 = arith.constant dense<0.000000e+00> : vector<8xf32>
    %314 = vector.multi_reduction <add>, %313, %cst_100 [1] : vector<8x8xf32> to vector<8xf32>
    %315 = vector.shape_cast %314 : vector<8xf32> to vector<8x1xf32>
    %316 = tpu.reciprocal %315 {approx = true} : vector<8x1xf32> -> vector<8x1xf32>
    %317 = vector.broadcast %316 : vector<8x1xf32> to vector<8x8xf32>
    %318 = arith.mulf %313, %317 : vector<8x8xf32>
    %cst_101 = arith.constant dense<0.000000e+00> : vector<8x32xf32>
    %319 = tpu.matmul %318, %255, %cst_101 {dimension_numbers = #tpu.dot_dimension_numbers<[1], [0], [0], [1], [0, 0, 1, 1], [], []>} : vector<8x8xf32>, vector<8x32xf32>, vector<8x32xf32> -> vector<8x32xf32>
    %320 = tpu.concatenate %271, %287, %303, %319 in 1 : vector<8x32xf32>, vector<8x32xf32>, vector<8x32xf32>, vector<8x32xf32> -> vector<8x128xf32>
    %321 = arith.truncf %320 : vector<8x128xf32> to vector<8x128xbf16>
    %c1_102 = arith.constant 1 : index
    %c0_103 = arith.constant 0 : index
    %c0_104 = arith.constant 0 : index
    %322 = vector.load %arg5[%c1_102, %c0_103, %c0_104] : memref<2x128x128xbf16, #tpu.memory_space<vmem>>, vector<1x128x128xbf16>
    %323 = vector.shape_cast %322 : vector<1x128x128xbf16> to vector<128x128xbf16>
    %cst_105 = arith.constant dense<0.000000e+00> : vector<8x128xf32>
    %324 = tpu.matmul %321, %323, %cst_105 {dimension_numbers = #tpu.dot_dimension_numbers<[1], [0], [0], [1], [0, 0, 1, 1], [], []>} : vector<8x128xbf16>, vector<128x128xbf16>, vector<8x128xf32> -> vector<8x128xf32>
    %325 = arith.addf %181, %324 : vector<8x128xf32>
    %c1_106 = arith.constant 1 : index
    %c0_107 = arith.constant 0 : index
    %c0_108 = arith.constant 0 : index
    %326 = vector.load %arg6[%c1_106, %c0_107, %c0_108] : memref<2x1x128xf32, #tpu.memory_space<vmem>>, vector<1x1x128xf32>
    %327 = vector.shape_cast %326 : vector<1x1x128xf32> to vector<1x128xf32>
    %328 = arith.mulf %325, %325 : vector<8x128xf32>
    %cst_109 = arith.constant dense<0.000000e+00> : vector<8xf32>
    %329 = vector.multi_reduction <add>, %328, %cst_109 [1] : vector<8x128xf32> to vector<8xf32>
    %330 = vector.shape_cast %329 : vector<8xf32> to vector<8x1xf32>
    %cst_110 = arith.constant 1.280000e+02 : f32
    %331 = vector.broadcast %cst_110 : f32 to vector<8x1xf32>
    %332 = arith.divf %330, %331 : vector<8x1xf32>
    %cst_111 = arith.constant 9.99999997E-7 : f32
    %333 = vector.broadcast %cst_111 : f32 to vector<8x1xf32>
    %334 = arith.addf %332, %333 : vector<8x1xf32>
    %335 = math.rsqrt %334 : vector<8x1xf32>
    %336 = vector.broadcast %335 : vector<8x1xf32> to vector<8x128xf32>
    %337 = arith.mulf %325, %336 : vector<8x128xf32>
    %338 = vector.broadcast %327 : vector<1x128xf32> to vector<8x128xf32>
    %339 = arith.mulf %337, %338 : vector<8x128xf32>
    %340 = arith.truncf %339 : vector<8x128xf32> to vector<8x128xbf16>
    %c1_112 = arith.constant 1 : index
    %c0_113 = arith.constant 0 : index
    %c0_114 = arith.constant 0 : index
    %341 = vector.load %arg7[%c1_112, %c0_113, %c0_114] : memref<2x128x512xbf16, #tpu.memory_space<vmem>>, vector<1x128x512xbf16>
    %342 = vector.shape_cast %341 : vector<1x128x512xbf16> to vector<128x512xbf16>
    %cst_115 = arith.constant dense<0.000000e+00> : vector<8x512xf32>
    %343 = tpu.matmul %340, %342, %cst_115 {dimension_numbers = #tpu.dot_dimension_numbers<[1], [0], [0], [1], [0, 0, 1, 1], [], []>} : vector<8x128xbf16>, vector<128x512xbf16>, vector<8x512xf32> -> vector<8x512xf32>
    %344 = vector.extract_strided_slice %343 {offsets = [0, 0], sizes = [8, 256], strides = [1, 1]} : vector<8x512xf32> to vector<8x256xf32>
    %345 = vector.extract_strided_slice %343 {offsets = [0, 256], sizes = [8, 256], strides = [1, 1]} : vector<8x512xf32> to vector<8x256xf32>
    %346 = arith.negf %344 : vector<8x256xf32>
    %347 = math.exp %346 : vector<8x256xf32>
    %cst_116 = arith.constant 1.000000e+00 : f32
    %348 = vector.broadcast %cst_116 : f32 to vector<8x256xf32>
    %349 = arith.addf %348, %347 : vector<8x256xf32>
    %350 = arith.divf %348, %349 : vector<8x256xf32>
    %351 = arith.mulf %344, %350 : vector<8x256xf32>
    %352 = arith.mulf %351, %345 : vector<8x256xf32>
    %353 = arith.truncf %352 : vector<8x256xf32> to vector<8x256xbf16>
    %c1_117 = arith.constant 1 : index
    %c0_118 = arith.constant 0 : index
    %c0_119 = arith.constant 0 : index
    %354 = vector.load %arg8[%c1_117, %c0_118, %c0_119] : memref<2x256x128xbf16, #tpu.memory_space<vmem>>, vector<1x256x128xbf16>
    %355 = vector.shape_cast %354 : vector<1x256x128xbf16> to vector<256x128xbf16>
    %cst_120 = arith.constant dense<0.000000e+00> : vector<8x128xf32>
    %356 = tpu.matmul %353, %355, %cst_120 {dimension_numbers = #tpu.dot_dimension_numbers<[1], [0], [0], [1], [0, 0, 1, 1], [], []>} : vector<8x256xbf16>, vector<256x128xbf16>, vector<8x128xf32> -> vector<8x128xf32>
    %357 = arith.addf %325, %356 : vector<8x128xf32>
    %c0_121 = arith.constant 0 : index
    %c0_122 = arith.constant 0 : index
    %358 = vector.load %arg9[%c0_121, %c0_122] : memref<1x128xf32, #tpu.memory_space<vmem>>, vector<1x128xf32>
    %359 = arith.mulf %357, %357 : vector<8x128xf32>
    %cst_123 = arith.constant dense<0.000000e+00> : vector<8xf32>
    %360 = vector.multi_reduction <add>, %359, %cst_123 [1] : vector<8x128xf32> to vector<8xf32>
    %361 = vector.shape_cast %360 : vector<8xf32> to vector<8x1xf32>
    %cst_124 = arith.constant 1.280000e+02 : f32
    %362 = vector.broadcast %cst_124 : f32 to vector<8x1xf32>
    %363 = arith.divf %361, %362 : vector<8x1xf32>
    %cst_125 = arith.constant 9.99999997E-7 : f32
    %364 = vector.broadcast %cst_125 : f32 to vector<8x1xf32>
    %365 = arith.addf %363, %364 : vector<8x1xf32>
    %366 = math.rsqrt %365 : vector<8x1xf32>
    %367 = vector.broadcast %366 : vector<8x1xf32> to vector<8x128xf32>
    %368 = arith.mulf %357, %367 : vector<8x128xf32>
    %369 = vector.broadcast %358 : vector<1x128xf32> to vector<8x128xf32>
    %370 = arith.mulf %368, %369 : vector<8x128xf32>
    %c0_126 = arith.constant 0 : index
    %c0_127 = arith.constant 0 : index
    %371 = vector.load %arg10[%c0_126, %c0_127] : memref<8x128xf32, #tpu.memory_space<vmem>>, vector<8x128xf32>
    tpu.vector_store %arg10[%c0_126, %c0_127], %370 {strides = array<i32>} : memref<8x128xf32, #tpu.memory_space<vmem>>, vector<8x128xf32>,
    return
  }
}

</mosaic_0001>

<bundles_post_ra>
// kernel: forward.1
= control target key start
LH: loop header
LB: loop body
LE: loop exit
PB: predicated region body
PF: predicated region fallthrough
CT: control target
= control target key end

     0   :  { %15 = vsyncpa [#allocation3], 0  ;;  %s4416_s0 = inlined_call_operand.vmem [shape: f32[8,128], index: 0, kind: input, shape index: {}]   ;;  %s4417_s1 = inlined_call_operand.vmem [shape: f32[8,32], index: 1, kind: input, shape index: {}]   ;;  %s4418_s2 = inlined_call_operand.vmem [shape: f32[8,32], index: 2, kind: input, shape index: {}]   ;;  %s4419_s3 = inlined_call_operand.vmem [shape: f32[2,1,128], index: 3, kind: input, shape index: {}]   ;;  %s4420_s4 = inlined_call_operand.hbm [shape: bf16[2,128,256], index: 4, kind: input, shape index: {}]   ;;  %s4421_s5 = inlined_call_operand.vmem [shape: bf16[2,128,128], index: 5, kind: input, shape index: {}]   ;;  %s4422_s6 = inlined_call_operand.vmem [shape: f32[2,1,128], index: 6, kind: input, shape index: {}]   ;;  %s4423_s7 = inlined_call_operand.hbm [shape: bf16[2,128,512], index: 7, kind: input, shape index: {}]   ;;  %s4424_s8 = inlined_call_operand.hbm [shape: bf16[2,256,128], index: 8, kind: input, shape index: {}]   ;;  %s4425_s9 = inlined_call_operand.vmem [shape: f32[1,128], index: 9, kind: input, shape index: {}]   ;;  %s4426_s10 = inlined_call_operand.hbm [shape: f32[8,128], index: 10, kind: output, shape index: {}]  }
   0x1   :  { %16 = vsyncpa [#allocation6], 0 }
   0x2   :  { %17 = vsyncpa [#allocation4], 0  ;;  %s3890_s13 = smov [#allocation5]   ;;  %s3796_s17 = scalar_lea.hbm %s4423_s7, 8192 }
   0x3   :  { %s47_s14 = sshll.u32 %s3890_s13, 4  ;;  %p3797_p0 = scmp.ne.s32.totalorder %s4423_s7, %s3796_s17  ;;  %s48_s14 = int_to_ptr.vmem [resolvable:$true] %s47_s14 }
   0x4   :  { %p3800_p1 = scmp.lt.u32.totalorder %s3796_s17, %s4423_s7 }
   0x6   :  { %p3802_p2 = pnand %p3800_p1, %p3797_p0 }
   0x8   :  { %3805 = shalt.err (!%p3802_p2)
}
   0x9   :  { %s3806_s22 = scalar_lea.vmem %s48_s14, 8192  ;;  %p3811_p4 = scmp.lt.s32.totalorder %s48_s14, %s48_s14 }
   0xa   :  { %p3807_p3 = scmp.ne.s32.totalorder %s48_s14, %s3806_s22  ;;  %p3812_p5 = scmp.lt.s32.totalorder %s3806_s22, %s3806_s22 }
   0xc   :  { %p3813_p6 = por %p3812_p5, %p3811_p4 }
   0xe   :  { %p3814_p7 = pnand %p3813_p6, %p3807_p3 }
  0x10   :  { %3817 = shalt.err (!%p3814_p7)
}
  0x11   :  { %s3891_s23 = smov 256   ;;  %s3892_s24 = smov 16  }
  0x12   :  { %53 = dma.hbm_to_vmem [thread:$0]  %s4423_s7, 8192, %s48_s14, [#allocation6], %s3891_s23, %s3891_s23, %s3892_s24  }
  0x13   :  { %s3893_s27 = smov [#allocation2]   ;;  %s3818_s11 = scalar_lea.hbm %s4420_s4, 4096 }
  0x14   :  { %s31_s28 = sshll.u32 %s3893_s27, 4  ;;  %p3819_p8 = scmp.ne.s32.totalorder %s4420_s4, %s3818_s11  ;;  %s32_s28 = int_to_ptr.vmem [resolvable:$true] %s31_s28 }
  0x15   :  { %p3822_p9 = scmp.lt.u32.totalorder %s3818_s11, %s4420_s4 }
  0x17   :  { %p3824_p10 = pnand %p3822_p9, %p3819_p8 }
  0x19   :  { %3827 = shalt.err (!%p3824_p10)
}
  0x1a   :  { %s3828_s17 = scalar_lea.vmem %s32_s28, 4096  ;;  %p3833_p12 = scmp.lt.s32.totalorder %s32_s28, %s32_s28 }
  0x1b   :  { %p3829_p11 = scmp.ne.s32.totalorder %s32_s28, %s3828_s17  ;;  %p3834_p13 = scmp.lt.s32.totalorder %s3828_s17, %s3828_s17 }
  0x1d   :  { %p3835_p0 = por %p3834_p13, %p3833_p12 }
  0x1f   :  { %p3836_p1 = pnand %p3835_p0, %p3829_p11 }
  0x21   :  { %3839 = shalt.err (!%p3836_p1)
}
  0x22   :  { %s3894_s7 = smov 128   ;;  %s3895_s14 = smov 8  }
  0x23   :  { %37 = dma.hbm_to_vmem [thread:$0]  %s4420_s4, 4096, %s32_s28, [#allocation3], %s3894_s7, %s3894_s7, %s3895_s14  }
  0x24   :  { %s3896_s20 = smov [#allocation7]   ;;  %s3840_s25 = scalar_lea.hbm %s4424_s8, 4096 }
  0x25   :  { %s59_s21 = sshll.u32 %s3896_s20, 4  ;;  %p3841_p2 = scmp.ne.s32.totalorder %s4424_s8, %s3840_s25  ;;  %s60_s21 = int_to_ptr.vmem [resolvable:$true] %s59_s21 }
  0x26   :  { %p3844_p3 = scmp.lt.u32.totalorder %s3840_s25, %s4424_s8 }
  0x28   :  { %p3846_p4 = pnand %p3844_p3, %p3841_p2 }
  0x2a   :  { %3849 = shalt.err (!%p3846_p4)
}
  0x2b   :  { %s3850_s11 = scalar_lea.vmem %s60_s21, 4096  ;;  %p3855_p6 = scmp.lt.s32.totalorder %s60_s21, %s60_s21 }
  0x2c   :  { %p3851_p5 = scmp.ne.s32.totalorder %s60_s21, %s3850_s11  ;;  %p3856_p7 = scmp.lt.s32.totalorder %s3850_s11, %s3850_s11 }
  0x2e   :  { %p3857_p8 = por %p3856_p7, %p3855_p6 }
  0x30   :  { %p3858_p9 = pnand %p3857_p8, %p3851_p5 }
  0x32   :  { %3861 = shalt.err (!%p3858_p9)
}
  0x33   :  { %s3897_s4 = smov 64   ;;  %s3898_s28 = smov 4  }
  0x34   :  { %65 = dma.hbm_to_vmem [thread:$0]  %s4424_s8, 4096, %s60_s21, [#allocation6], %s3897_s4, %s3897_s4, %s3898_s28  }
  0x35   :  { %3884 = dma.done.wait [#allocation3], 4096  }
  0x36   :  { %3885 = vsyncadd [#allocation3], 4294963200 }
  0x37   :  { %3886 = dma.done.wait [#allocation6], 12288  }
  0x38   :  { %3887 = vsyncadd [#allocation6], 4294955008  ;;  %v4005_v0 = vld [vmem:[%s4416_s0] sm:$0xff]  ;;  %v3548_v4 = vld [vmem:[#allocation2 + $0x14] ss:$8 sps:$4 sm:$0xff]   ;;  %v3899_v15 = vmov 0   ;;  %v81_v52 = vlaneseq }
  0x39   :  { %v87_v1 = vmul.f32 %v4005_v0, %v4005_v0  ;;  %v3545_v2 = vld [vmem:[#allocation2 + $0x4] ss:$8 sps:$4 sm:$0xff]   ;;  %v3547_v3 = vld [vmem:[#allocation2] ss:$8 sps:$4 sm:$0xff]   ;;  %v3550_v5 = vld [vmem:[#allocation2 + $0x10] ss:$8 sps:$4 sm:$0xff]   ;;  %231 = vmatprep.mubr.bf16.mxu0 %v3899_v15 }
  0x3a   :  { %199 = vmatprep.subr.bf16.mxu0 %v3545_v2  ;;  %v3551_v6 = vld [vmem:[#allocation2 + $0x24] ss:$8 sps:$4 sm:$0xff]   ;;  %v3553_v7 = vld [vmem:[#allocation2 + $0x20] ss:$8 sps:$4 sm:$0xff]   ;;  %v3554_v8 = vld [vmem:[#allocation2 + $0x34] ss:$8 sps:$4 sm:$0xff]  }
  0x3b   :  { %88 = vadd.xlane.f32.xlu0 %v87_v1  ;;  %200 = vmatpush1.bf16.msra.mxu0 %v3547_v3  ;;  %v3556_v9 = vld [vmem:[#allocation2 + $0x30] ss:$8 sps:$4 sm:$0xff]   ;;  %v3557_v10 = vld [vmem:[#allocation2 + $0x44] ss:$8 sps:$4 sm:$0xff]   ;;  %v3559_v11 = vld [vmem:[#allocation2 + $0x40] ss:$8 sps:$4 sm:$0xff]  }
  0x3c   :  { %201 = vmatprep.subr.bf16.mxu0 %v3548_v4  ;;  %v3560_v12 = vld [vmem:[#allocation2 + $0x54] ss:$8 sps:$4 sm:$0xff]   ;;  %v3562_v13 = vld [vmem:[#allocation2 + $0x50] ss:$8 sps:$4 sm:$0xff]   ;;  %v3563_v14 = vld [vmem:[#allocation2 + $0x64] ss:$8 sps:$4 sm:$0xff]  }
  0x3d   :  { %v3565_v16 = vld [vmem:[#allocation2 + $0x60] ss:$8 sps:$4 sm:$0xff]   ;;  %v3566_v17 = vld [vmem:[#allocation2 + $0x74] ss:$8 sps:$4 sm:$0xff]   ;;  %v3568_v18 = vld [vmem:[#allocation2 + $0x70] ss:$8 sps:$4 sm:$0xff]  }
  0x3e   :  { %v3118_v23 = vld [vmem:[%s4419_s3] ss:$0 sm:$0xff]  ;;  %v3900_v27 = vmov 0.0   ;;  %vm3901_vm0 = vmmov 0   ;;  %s3902_s17 = smov 112   ;;  %s3903_s18 = smov 32  }
  0x3f   :  { %202 = vmatpush1.bf16.msra.mxu0 %v3550_v5  ;;  %3407 = vmatprep.subr.mxu1 %v3900_v27  ;;  %v4036_v34 = vld [vmem:[%s4417_s1] sm:$0xff]  ;;  %s3904_s19 = smov 80   ;;  %vm249_vm1 = vcmask 130048   ;;  %vm333_vm2 = vcmask 261120   ;;  %v82_v53 = vshrl.u32 %v81_v52, 7  ;;  %v84_v54 = vand.u32 127, %v81_v52 }
  0x40   :  { %203 = vmatprep.subr.bf16.mxu0 %v3551_v6  ;;  %3409 = vmatprep.mubr.msk.f32.mxu1 %vm3901_vm0, %v3900_v27  ;;  %v4049_v36 = vld [vmem:[%s4418_s2] sm:$0xff]  ;;  %vm412_vm4 = vcmask 64512   ;;  %s3905_s1 = smov 48   ;;  %s3906_s22 = smov 96   ;;  %vm1004_vm5 = vcmask 523264   ;;  %vm1006_vm6 = vcmask 785408  }
  0x41   :  { %vm4070_vm3 = vcmp.le.s32.totalorder %v84_v54, %v82_v53  ;;  %s3907_s8 = smov [#allocation8]  }
  0x42   :  { %s3108_s7 = sshll.u32 %s3907_s8, 4  ;;  %s3109_s7 = int_to_ptr.vmem [resolvable:$true] %s3108_s7 }
  0x43   :  { %204 = vmatpush1.bf16.msra.mxu0 %v3553_v7  ;;  %s3862_s14 = scalar_lea.vmem %s3109_s7, 128  ;;  %p3867_p11 = scmp.lt.s32.totalorder %s3109_s7, %s3109_s7 }
  0x44   :  { %205 = vmatprep.subr.bf16.mxu0 %v3554_v8  ;;  %p3863_p10 = scmp.ne.s32.totalorder %s3109_s7, %s3862_s14  ;;  %p3868_p12 = scmp.lt.s32.totalorder %s3862_s14, %s3862_s14 }
  0x46   :  { %p3869_p13 = por %p3868_p12, %p3867_p11 }
  0x47   :  { %206 = vmatpush1.bf16.msra.mxu0 %v3556_v9 }
  0x48   :  { %207 = vmatprep.subr.bf16.mxu0 %v3557_v10  ;;  %p3870_p0 = pnand %p3869_p13, %p3863_p10 }
  0x4b   :  { %208 = vmatpush1.bf16.msra.mxu0 %v3559_v11 }
  0x4c   :  { %209 = vmatprep.subr.bf16.mxu0 %v3560_v12 }
  0x4f   :  { %210 = vmatpush1.bf16.msra.mxu0 %v3562_v13 }
  0x50   :  { %211 = vmatprep.subr.bf16.mxu0 %v3563_v14 }
  0x53   :  { %212 = vmatpush1.bf16.msra.mxu0 %v3565_v16 }
  0x54   :  { %213 = vmatprep.subr.bf16.mxu0 %v3566_v17 }
  0x57   :  { %214 = vmatpush1.bf16.msra.mxu0 %v3568_v18 }
  0x58   :  { %3447 = vmatprep.subr.bf16.mxu0 %v3900_v27 }
  0xc8   :  { %v89_v19 = vpop.xlane.xlu0 %88 }
  0xc9   :  { %v91_v20 = vmul.f32 0.0078125, %v89_v19 }
  0xcb   :  { %v92_v21 = vadd.f32 1e-06, %v91_v20 }
  0xcd   :  { %3737 = vrsqrt.f32 %v92_v21 }
  0xd7   :  { %v3738_v22 = vpop.eup %3737 }
  0xd8   :  { %v94_v24 = vmul.f32 %v3738_v22, %v4005_v0 }
  0xda   :  { %v101_v25 = vmul.f32 %v3118_v23, %v94_v24 }
  0xdc   :  { %v102_v26 = vpack.c.bf16 %v101_v25, %v101_v25 }
  0xde   :  { %232 = vmatmul.mubr.bf16.vlgmr.msra.gmra.mrb[0].mxu0 %v102_v26 }
  0xdf   :  { %3463 = vmatprep.mubr.msk.bf16.mxu0 %vm3901_vm0, %v3900_v27 }
 0x1b1   :  { %v4016_v28 = vpop.f32.mrb[0].mxu0 }
 0x1b2   :  { %v4018_v29 = vpop.f32.mrb[1].mxu0  ;;  %v4029_v33 = vsub.f32 0.0, %v4016_v28  ;;  %v251_v45 = vmul.f32 %v4016_v28, %v4036_v34 }
 0x1b3   :  { %312 = vrot.lane.b32.xlu1 %v4018_v29, %s3892_s24  ;;  %v237_v30 = vpop.f32.mrb[2].mxu0  ;;  %v306_v31 = vsub.f32 0.0, %v4018_v29  ;;  %v316_v41 = vmul.f32 %v4018_v29, %v4036_v34 }
 0x1b4   :  { %v238_v32 = vpop.f32.mrb[3].mxu0 }
 0x1b5   :  { %308 = vrot.lane.b32.xlu0 %v306_v31, %s3902_s17 }
 0x1b7   :  { %242 = vrot.lane.b32.xlu1 %v4029_v33, %s3902_s17 }
 0x1b9   :  { %262 = vrot.lane.b32.xlu0 %v4036_v34, %s3903_s18 }
 0x1bb   :  { %246 = vrot.lane.b32.xlu1 %v4016_v28, %s3892_s24 }
 0x1bf   :  { %254 = vrot.lane.b32.xlu1 %v4029_v33, %s3904_s19 }
 0x1c3   :  { %257 = vrot.lane.b32.xlu1 %v4016_v28, %s3902_s17 }
 0x225   :  { %v313_v35 = vpop.permute.xlu1 %312 }
 0x227   :  { %v309_v37 = vpop.permute.xlu0 %308 }
 0x228   :  { %v315_v38 = vsel %vm249_vm1, %v309_v37, %v313_v35 }
 0x229   :  { %v317_v39 = vmul.f32 %v315_v38, %v4049_v36  ;;  %v243_v40 = vpop.permute.xlu1 %242 }
 0x22b   :  { %v4055_v42 = vadd.f32 %v317_v39, %v316_v41  ;;  %v4096_v12 = vpop.permute.xlu0 %262 }
 0x22c   :  { %v265_v14 = vmul.f32 %v4096_v12, %v4016_v28  ;;  %v326_v32 = vmul.f32 %v4096_v12, %v4018_v29 }
 0x22d   :  { %v247_v43 = vpop.permute.xlu1 %246  ;;  %3408 = vmatpush3.xpose.msk.msra.mxu1 %vm333_vm2, %v4055_v42 }
 0x22e   :  { %v250_v44 = vsel %vm249_vm1, %v243_v40, %v247_v43  ;;  %3412 = vmatprep.subr.mxu1 %v3900_v27 }
 0x22f   :  { %v252_v46 = vmul.f32 %v250_v44, %v4049_v36 }
 0x231   :  { %v253_v47 = vadd.f32 %v252_v46, %v251_v45  ;;  %v255_v48 = vpop.permute.xlu1 %254 }
 0x233   :  { %3410 = vmatmul.mubr.msk.f32.vlgmr.msra.gmra.mrb[0].mxu1 %vm333_vm2, %v253_v47 }
 0x234   :  { %3414 = vmatprep.mubr.msk.f32.mxu1 %vm3901_vm0, %v3900_v27 }
 0x235   :  { %v258_v49 = vpop.permute.xlu1 %257 }
 0x236   :  { %v260_v50 = vsel %vm249_vm1, %v255_v48, %v258_v49 }
 0x237   :  { %v266_v51 = vmul.f32 %v260_v50, %v4049_v36 }
 0x239   :  { %268 = vrot.lane.b32.xlu0 %v266_v51, %s3903_s18 }
 0x2ab   :  { %v269_v13 = vpop.permute.xlu0 %268 }
 0x2ac   :  { %v271_v16 = vadd.f32 %v269_v13, %v265_v14 }
 0x306   :  { %v406_v55 = vpop.f32.mrb[0].mxu1 }
 0x307   :  { %v410_v57 = vmul.f32 0.17677669, %v406_v55  ;;  %v3411_v58 = vpop.f32.mrb[1].mxu1 }
 0x309   :  { %v411_v59 = vsel %vm4070_vm3, %v410_v57, -1e+30 }
 0x30a   :  { %v413_v60 = vsel %vm412_vm4, %v411_v59, -inf }
 0x30b   :  { %414 = vmax.xlane.f32.xlu1 %v413_v60 }
 0x31c   :  { %424 = vrot.lane.b32.xlu1 %v4018_v29, %s3897_s4 }
 0x320   :  { %319 = vrot.lane.b32.xlu1 %v306_v31, %s3904_s19 }
 0x324   :  { %322 = vrot.lane.b32.xlu1 %v4018_v29, %s3902_s17 }
 0x328   :  { %272 = vrot.lane.b32.xlu1 %v4029_v33, %s3905_s1 }
 0x32c   :  { %275 = vrot.lane.b32.xlu1 %v4016_v28, %s3904_s19 }
 0x398   :  { %v415_v61 = vpop.xlane.xlu1 %414 }
 0x399   :  { %v416_v62 = vsub.f32 %v411_v59, %v415_v61 }
 0x39b   :  { %v417_v63 = vmul.f32 1.442695, %v416_v62 }
 0x39c   :  { %v425_v1 = vpop.permute.xlu1 %424 }
 0x39d   :  { %3739 = vpow2.f32 %v417_v63  ;;  %3413 = vmatpush3.msra.mxu1 %v425_v1 }
 0x39e   :  { %3417 = vmatprep.subr.mxu1 %v3900_v27 }
 0x3a0   :  { %v320_v2 = vpop.permute.xlu1 %319 }
 0x3a4   :  { %v323_v3 = vpop.permute.xlu1 %322 }
 0x3a5   :  { %v325_v4 = vsel %vm249_vm1, %v320_v2, %v323_v3 }
 0x3a6   :  { %v327_v5 = vmul.f32 %v325_v4, %v4049_v36 }
 0x3a7   :  { %v3740_v6 = vpop.eup %3739 }
 0x3a8   :  { %329 = vrot.lane.b32.xlu1 %v327_v5, %s3903_s18  ;;  %v273_v7 = vpop.permute.xlu1 %272  ;;  %v419_v8 = vsel %vm412_vm4, %v3740_v6, 0.0 }
 0x3a9   :  { %420 = vadd.xlane.f32.xlu0 %v419_v8 }
 0x3ac   :  { %279 = vrot.lane.b32.xlu1 %v4036_v34, %s3897_s4  ;;  %v276_v9 = vpop.permute.xlu1 %275 }
 0x3ad   :  { %v278_v10 = vsel %vm249_vm1, %v273_v7, %v276_v9 }
 0x3ae   :  { %v283_v11 = vmul.f32 %v278_v10, %v4049_v36 }
 0x3b0   :  { %285 = vrot.lane.b32.xlu1 %v283_v11, %s3897_s4 }
 0x3bf   :  { %501 = vrot.lane.b32.xlu0 %v271_v16, %s3906_s22 }
 0x41a   :  { %v330_v31 = vpop.permute.xlu1 %329 }
 0x41b   :  { %v332_v35 = vadd.f32 %v330_v31, %v326_v32  ;;  %v3569_v32 = vld [vmem:[%s4421_s5] sm:$0xff]  }
 0x41c   :  { %3448 = vmatpush3.bf16.msra.mxu0 %v3569_v32 }
 0x41d   :  { %3449 = vmatprep.subr.bf16.mxu0 %v3900_v27 }
 0x41e   :  { %v4124_v43 = vpop.permute.xlu1 %279 }
 0x41f   :  { %v282_v46 = vmul.f32 %v4124_v43, %v4016_v28 }
 0x422   :  { %v286_v45 = vpop.permute.xlu1 %285 }
 0x436   :  { %v421_v17 = vpop.xlane.xlu0 %420 }
 0x437   :  { %3741 = vrcp.f32 %v421_v17 }
 0x43a   :  { %v502_v20 = vpop.permute.xlu0 %501 }
 0x441   :  { %v3742_v18 = vpop.eup %3741 }
 0x442   :  { %v423_v19 = vmul.f32 %v3742_v18, %v3740_v6 }
 0x444   :  { %3415 = vmatmul.mubr.msk.f32.vlgmr.msra.gmra.mrb[2].mxu1 %vm412_vm4, %v423_v19 }
 0x445   :  { %3418 = vmatpush3.xpose.msk.msra.mxu1 %vm333_vm2, %v4055_v42  ;;  %3419 = vmatprep.mubr.msk.f32.mxu1 %vm3901_vm0, %v3900_v27 }
 0x446   :  { %3422 = vmatprep.subr.mxu1 %v3900_v27 }
 0x448   :  { %3420 = vmatmul.mubr.msk.f32.vlgmr.msra.gmra.mrb[4].mxu1 %vm333_vm2, %v502_v20 }
 0x449   :  { %3423 = vmatpush3.msra.mxu1 %v425_v1  ;;  %3424 = vmatprep.mubr.msk.f32.mxu1 %vm3901_vm0, %v3900_v27 }
 0x44a   :  { %3427 = vmatprep.subr.mxu1 %v3900_v27 }
 0x517   :  { %v4111_v21 = vpop.f32.mrb[2].mxu1 }
 0x518   :  { %v3416_v22 = vpop.f32.mrb[3].mxu1 }
 0x51b   :  { %v571_v23 = vpop.f32.mrb[4].mxu1 }
 0x51c   :  { %v575_v24 = vmul.f32 0.17677669, %v571_v23  ;;  %v3421_v25 = vpop.f32.mrb[5].mxu1 }
 0x51e   :  { %v576_v26 = vsel %vm4070_vm3, %v575_v24, -1e+30 }
 0x51f   :  { %v577_v30 = vsel %vm412_vm4, %v576_v26, -inf }
 0x520   :  { %578 = vmax.xlane.f32.xlu0 %v577_v30 }
 0x536   :  { %665 = vrot.lane.b32.xlu0 %v332_v35, %s3906_s22  ;;  %v3570_v35 = vld [vmem:[%s4421_s5 + $0x8] sm:$0xff]  }
 0x537   :  { %3450 = vmatpush3.bf16.msra.mxu0 %v3570_v35 }
 0x538   :  { %3451 = vmatprep.subr.bf16.mxu0 %v3900_v27 }
 0x53a   :  { %289 = vrot.lane.b32.xlu0 %v4029_v33, %s3892_s24  ;;  %v288_v33 = vadd.f32 %v286_v45, %v282_v46 }
 0x53e   :  { %292 = vrot.lane.b32.xlu0 %v4016_v28, %s3905_s1 }
 0x5ad   :  { %v579_v37 = vpop.xlane.xlu0 %578 }
 0x5ae   :  { %v580_v38 = vsub.f32 %v576_v26, %v579_v37  ;;  %v3571_v37 = vld [vmem:[%s4421_s5 + $0x10] sm:$0xff]  }
 0x5af   :  { %3452 = vmatpush3.bf16.msra.mxu0 %v3571_v37 }
 0x5b0   :  { %v581_v39 = vmul.f32 1.442695, %v580_v38  ;;  %v3572_v38 = vld [vmem:[%s4421_s5 + $0x18] sm:$0xff]   ;;  %3453 = vmatprep.subr.bf16.mxu0 %v3900_v27 }
 0x5b1   :  { %v666_v42 = vpop.permute.xlu0 %665 }
 0x5b2   :  { %3743 = vpow2.f32 %v581_v39  ;;  %v3573_v39 = vld [vmem:[%s4421_s5 + $0x20] sm:$0xff]  }
 0x5b3   :  { %3454 = vmatpush3.bf16.msra.mxu0 %v3572_v38  ;;  %v3155_v38 = vld [vmem:[%s4422_s6] ss:$0 sm:$0xff] }
 0x5b4   :  { %3455 = vmatprep.subr.bf16.mxu0 %v3900_v27 }
 0x5b5   :  { %v290_v44 = vpop.permute.xlu0 %289 }
 0x5b7   :  { %3456 = vmatpush3.bf16.msra.mxu0 %v3573_v39 }
 0x5b8   :  { %3457 = vmatprep.subr.bf16.mxu0 %v3900_v27 }
 0x5b9   :  { %v293_v47 = vpop.permute.xlu0 %292 }
 0x5ba   :  { %v295_v48 = vsel %vm249_vm1, %v290_v44, %v293_v47 }
 0x5bb   :  { %v300_v49 = vmul.f32 %v295_v48, %v4049_v36 }
 0x5bc   :  { %v3744_v40 = vpop.eup %3743 }
 0x5bd   :  { %v583_v41 = vsel %vm412_vm4, %v3744_v40, 0.0 }
 0x5be   :  { %584 = vadd.xlane.f32.xlu1 %v583_v41  ;;  %v3575_v41 = vld [vmem:[%s4421_s5 + $0x30] sm:$0xff]  }
 0x5cf   :  { %662 = vrot.lane.b32.xlu1 %v288_v33, %s3897_s4 }
 0x5d3   :  { %296 = vrot.lane.b32.xlu1 %v4036_v34, %s3906_s22 }
 0x5d7   :  { %302 = vrot.lane.b32.xlu1 %v300_v49, %s3906_s22 }
 0x64b   :  { %v585_v50 = vpop.xlane.xlu1 %584 }
 0x64c   :  { %3745 = vrcp.f32 %v585_v50 }
 0x64f   :  { %v663_v53 = vpop.permute.xlu1 %662 }
 0x653   :  { %v4149_v5 = vpop.permute.xlu1 %296 }
 0x654   :  { %v299_v7 = vmul.f32 %v4149_v5, %v4016_v28 }
 0x656   :  { %v3746_v51 = vpop.eup %3745 }
 0x657   :  { %v587_v52 = vmul.f32 %v3746_v51, %v3744_v40  ;;  %v303_v6 = vpop.permute.xlu1 %302  ;;  %v3574_v40 = vld [vmem:[%s4421_s5 + $0x28] sm:$0xff]  }
 0x658   :  { %v305_v8 = vadd.f32 %v303_v6, %v299_v7  ;;  %3458 = vmatpush3.bf16.msra.mxu0 %v3574_v40 }
 0x659   :  { %3425 = vmatmul.mubr.msk.f32.vlgmr.msra.gmra.mrb[6].mxu1 %vm412_vm4, %v587_v52  ;;  %3459 = vmatprep.subr.bf16.mxu0 %v3900_v27  ;;  %v3577_v52 = vld [vmem:[#allocation5] ss:$16 sps:$4 sm:$0xff]  }
 0x65a   :  { %3428 = vmatpush3.xpose.msk.msra.mxu1 %vm333_vm2, %v666_v42  ;;  %3429 = vmatprep.mubr.msk.f32.mxu1 %vm3901_vm0, %v3900_v27 }
 0x65b   :  { %3432 = vmatprep.subr.mxu1 %v3900_v27 }
 0x65c   :  { %3460 = vmatpush3.bf16.msra.mxu0 %v3575_v41 }
 0x65d   :  { %3430 = vmatmul.mubr.msk.f32.vlgmr.msra.gmra.mrb[8].mxu1 %vm333_vm2, %v663_v53  ;;  %3461 = vmatprep.subr.bf16.mxu0 %v3900_v27  ;;  %v3579_v53 = vld [vmem:[#allocation5 + $0x4] ss:$16 sps:$4 sm:$0xff]  }
 0x65e   :  { %3434 = vmatprep.mubr.msk.f32.mxu1 %vm3901_vm0, %v3900_v27 }
 0x72c   :  { %v657_v54 = vpop.f32.mrb[6].mxu1 }
 0x72d   :  { %v3426_v55 = vpop.f32.mrb[7].mxu1 }
 0x72e   :  { %v3582_v55 = vld [vmem:[#allocation5 + $0xc] ss:$16 sps:$4 sm:$0xff]  }
 0x730   :  { %v737_v57 = vpop.f32.mrb[8].mxu1 }
 0x731   :  { %v741_v58 = vmul.f32 0.17677669, %v737_v57  ;;  %v3431_v59 = vpop.f32.mrb[9].mxu1  ;;  %v3585_v57 = vld [vmem:[#allocation5 + $0x24] ss:$16 sps:$4 sm:$0xff]  }
 0x732   :  { %v3583_v59 = vld [vmem:[#allocation5 + $0x20] ss:$16 sps:$4 sm:$0xff]  }
 0x733   :  { %v742_v60 = vsel %vm4070_vm3, %v741_v58, -1e+30  ;;  %v3588_v58 = vld [vmem:[#allocation5 + $0x2c] ss:$16 sps:$4 sm:$0xff]  }
 0x734   :  { %v743_v61 = vsel %vm412_vm4, %v742_v60, -inf }
 0x735   :  { %744 = vmax.xlane.f32.xlu0 %v743_v61  ;;  %v3594_v61 = vld [vmem:[#allocation5 + $0x4c] ss:$16 sps:$4 sm:$0xff]  }
 0x74b   :  { %754 = vrot.lane.b32.xlu0 %v4018_v29, %s3903_s18 }
 0x7c2   :  { %v745_v62 = vpop.xlane.xlu0 %744 }
 0x7c3   :  { %v746_v63 = vsub.f32 %v742_v60, %v745_v62  ;;  %v3591_v60 = vld [vmem:[#allocation5 + $0x44] ss:$16 sps:$4 sm:$0xff]   ;;  %v3589_v62 = vld [vmem:[#allocation5 + $0x40] ss:$16 sps:$4 sm:$0xff]  }
 0x7c5   :  { %v747_v1 = vmul.f32 1.442695, %v746_v63  ;;  %v3592_v63 = vld [vmem:[#allocation5 + $0x48] ss:$16 sps:$4 sm:$0xff]  }
 0x7c6   :  { %v755_v2 = vpop.permute.xlu0 %754 }
 0x7c7   :  { %3747 = vpow2.f32 %v747_v1  ;;  %3433 = vmatpush3.msra.mxu1 %v755_v2 }
 0x7c8   :  { %3437 = vmatprep.subr.mxu1 %v3900_v27 }
 0x7d1   :  { %v3748_v3 = vpop.eup %3747 }
 0x7d2   :  { %v749_v4 = vsel %vm412_vm4, %v3748_v3, 0.0 }
 0x7d3   :  { %750 = vadd.xlane.f32.xlu1 %v749_v4 }
 0x7e4   :  { %831 = vrot.lane.b32.xlu1 %v305_v8, %s3903_s18  ;;  %v3597_v8 = vld [vmem:[#allocation5 + $0x64] ss:$16 sps:$4 sm:$0xff]  }
 0x860   :  { %v751_v29 = vpop.xlane.xlu1 %750 }
 0x861   :  { %3749 = vrcp.f32 %v751_v29  ;;  %v3600_v29 = vld [vmem:[#allocation5 + $0x6c] ss:$16 sps:$4 sm:$0xff]  }
 0x864   :  { %v832_v11 = vpop.permute.xlu1 %831 }
 0x86b   :  { %v3750_v9 = vpop.eup %3749 }
 0x86c   :  { %v753_v10 = vmul.f32 %v3750_v9, %v3748_v3  ;;  %v3595_v9 = vld [vmem:[#allocation5 + $0x60] ss:$16 sps:$4 sm:$0xff]  }
 0x86e   :  { %3435 = vmatmul.mubr.msk.f32.vlgmr.msra.gmra.mrb[10].mxu1 %vm412_vm4, %v753_v10  ;;  %v3598_v10 = vld [vmem:[#allocation5 + $0x68] ss:$16 sps:$4 sm:$0xff]  }
 0x86f   :  { %3438 = vmatpush3.xpose.msk.msra.mxu1 %vm333_vm2, %v666_v42  ;;  %3439 = vmatprep.mubr.msk.f32.mxu1 %vm3901_vm0, %v3900_v27  ;;  %v3576_v42 = vld [vmem:[%s4421_s5 + $0x38] sm:$0xff]  }
 0x870   :  { %3442 = vmatprep.subr.mxu1 %v3900_v27  ;;  %3462 = vmatpush3.bf16.msra.mxu0 %v3576_v42  ;;  %v3625_v42 = vld [vmem:[#allocation7 + $0x40] sm:$0xff]  }
 0x871   :  { %1363 = vmatprep.subr.bf16.mxu0 %v3582_v55  ;;  %v3638_v55 = vld [vmem:[#allocation7 + $0x30] sm:$0xff]  }
 0x872   :  { %3440 = vmatmul.mubr.msk.f32.vlgmr.msra.gmra.mrb[12].mxu1 %vm333_vm2, %v832_v11  ;;  %v3601_v11 = vld [vmem:[#allocation5 + $0x80] ss:$16 sps:$4 sm:$0xff]  }
 0x873   :  { %3443 = vmatpush3.msra.mxu1 %v755_v2  ;;  %3444 = vmatprep.mubr.msk.f32.mxu1 %vm3901_vm0, %v3900_v27 }
 0x874   :  { %1322 = vmatprep.subr.bf16.mxu1 %v3579_v53  ;;  %v3636_v53 = vld [vmem:[#allocation7 + $0x28] sm:$0xff]  }
 0x941   :  { %v826_v28 = vpop.f32.mrb[10].mxu1 }
 0x942   :  { %v3436_v13 = vpop.f32.mrb[11].mxu1 }
 0x943   :  { %v3604_v13 = vld [vmem:[#allocation5 + $0x88] ss:$16 sps:$4 sm:$0xff]  }
 0x945   :  { %v901_v14 = vpop.f32.mrb[12].mxu1 }
 0x946   :  { %v905_v16 = vmul.f32 0.17677669, %v901_v14  ;;  %v3441_v17 = vpop.f32.mrb[13].mxu1  ;;  %v3609_v14 = vld [vmem:[#allocation5 + $0xa4] ss:$16 sps:$4 sm:$0xff]  }
 0x947   :  { %v3607_v17 = vld [vmem:[#allocation5 + $0xa0] ss:$16 sps:$4 sm:$0xff]  }
 0x948   :  { %v906_v18 = vsel %vm4070_vm3, %v905_v16, -1e+30  ;;  %v3612_v16 = vld [vmem:[#allocation5 + $0xac] ss:$16 sps:$4 sm:$0xff]  }
 0x949   :  { %v907_v19 = vsel %vm412_vm4, %v906_v18, -inf }
 0x94a   :  { %908 = vmax.xlane.f32.xlu0 %v907_v19  ;;  %v3615_v19 = vld [vmem:[#allocation5 + $0xc4] ss:$16 sps:$4 sm:$0xff]  }
 0x960   :  { %992 = vrot.lane.b32.xlu0 %v657_v54, %s3903_s18  ;;  %v3580_v54 = vld [vmem:[#allocation5 + $0x8] ss:$16 sps:$4 sm:$0xff]  }
 0x9d7   :  { %v909_v20 = vpop.xlane.xlu0 %908 }
 0x9d8   :  { %v910_v22 = vsub.f32 %v906_v18, %v909_v20  ;;  %v3610_v18 = vld [vmem:[#allocation5 + $0xa8] ss:$16 sps:$4 sm:$0xff]   ;;  %v3618_v20 = vld [vmem:[#allocation5 + $0xcc] ss:$16 sps:$4 sm:$0xff]  }
 0x9da   :  { %v911_v23 = vmul.f32 1.442695, %v910_v22  ;;  %v3613_v22 = vld [vmem:[#allocation5 + $0xc0] ss:$16 sps:$4 sm:$0xff]  }
 0x9db   :  { %v993_v46 = vpop.permute.xlu0 %992 }
 0x9dc   :  { %3751 = vpow2.f32 %v911_v23  ;;  %v1003_v47 = vsel %vm333_vm2, %v4111_v21, %v993_v46  ;;  %v3586_v21 = vld [vmem:[#allocation5 + $0x28] ss:$16 sps:$4 sm:$0xff]  }
 0x9dd   :  { %v3616_v23 = vld [vmem:[#allocation5 + $0xc8] ss:$16 sps:$4 sm:$0xff]  }
 0x9de   :  { %v3628_v46 = vld [vmem:[#allocation7 + $0x8] sm:$0xff]  }
 0x9e6   :  { %v3752_v24 = vpop.eup %3751 }
 0x9e7   :  { %v913_v25 = vsel %vm412_vm4, %v3752_v24, 0.0 }
 0x9e8   :  { %914 = vadd.xlane.f32.xlu1 %v913_v25  ;;  %v3624_v25 = vld [vmem:[#allocation5 + $0xec] ss:$16 sps:$4 sm:$0xff]  }
 0x9f9   :  { %996 = vrot.lane.b32.xlu1 %v826_v28, %s3897_s4  ;;  %v3603_v28 = vld [vmem:[#allocation5 + $0x84] ss:$16 sps:$4 sm:$0xff]  }
 0xa75   :  { %v915_v26 = vpop.xlane.xlu1 %914 }
 0xa76   :  { %3753 = vrcp.f32 %v915_v26  ;;  %v3619_v26 = vld [vmem:[#allocation5 + $0xe0] ss:$16 sps:$4 sm:$0xff]  }
 0xa79   :  { %v997_v33 = vpop.permute.xlu1 %996 }
 0xa7a   :  { %v1005_v48 = vsel %vm1004_vm5, %v1003_v47, %v997_v33  ;;  %v3629_v33 = vld [vmem:[#allocation7 + $0x50] sm:$0xff]  }
 0xa7b   :  { %v3630_v47 = vld [vmem:[#allocation7 + $0x10] sm:$0xff]  }
 0xa80   :  { %v3754_v30 = vpop.eup %3753 }
 0xa81   :  { %v917_v31 = vmul.f32 %v3754_v30, %v3752_v24  ;;  %v3621_v24 = vld [vmem:[#allocation5 + $0xe4] ss:$16 sps:$4 sm:$0xff]   ;;  %v3622_v30 = vld [vmem:[#allocation5 + $0xe8] ss:$16 sps:$4 sm:$0xff]  }
 0xa83   :  { %3445 = vmatmul.mubr.msk.f32.vlgmr.msra.gmra.mrb[14].mxu1 %vm412_vm4, %v917_v31 }
 0xa84   :  { %1354 = vmatprep.mubr.bf16.mxu1 %v3899_v15  ;;  %1323 = vmatpush1.bf16.msra.mxu1 %v3577_v52  ;;  %v3635_v52 = vld [vmem:[#allocation7 + $0x68] sm:$0xff]  }
 0xa85   :  { %1324 = vmatprep.subr.bf16.mxu1 %v3585_v57  ;;  %v3639_v57 = vld [vmem:[#allocation7 + $0x78] sm:$0xff]  }
 0xa88   :  { %1325 = vmatpush1.bf16.msra.mxu1 %v3583_v59 }
 0xa89   :  { %1326 = vmatprep.subr.bf16.mxu1 %v3591_v60 }
 0xa8c   :  { %1327 = vmatpush1.bf16.msra.mxu1 %v3589_v62 }
 0xa8d   :  { %1328 = vmatprep.subr.bf16.mxu1 %v3597_v8 }
 0xa90   :  { %1329 = vmatpush1.bf16.msra.mxu1 %v3595_v9 }
 0xa91   :  { %1330 = vmatprep.subr.bf16.mxu1 %v3603_v28 }
 0xa94   :  { %1331 = vmatpush1.bf16.msra.mxu1 %v3601_v11 }
 0xa95   :  { %1332 = vmatprep.subr.bf16.mxu1 %v3609_v14 }
 0xa98   :  { %1333 = vmatpush1.bf16.msra.mxu1 %v3607_v17 }
 0xa99   :  { %1334 = vmatprep.subr.bf16.mxu1 %v3615_v19  ;;  %v3643_v19 = vld [vmem:[#allocation2 + $0x84] ss:$8 sps:$4 sm:$0xff]  }
 0xa9c   :  { %1335 = vmatpush1.bf16.msra.mxu1 %v3613_v22  ;;  %v3644_v22 = vld [vmem:[#allocation2 + $0x90] ss:$8 sps:$4 sm:$0xff]  }
 0xa9d   :  { %1336 = vmatprep.subr.bf16.mxu1 %v3621_v24  ;;  %v3647_v24 = vld [vmem:[#allocation2 + $0xa0] ss:$8 sps:$4 sm:$0xff]  }
 0xaa0   :  { %1337 = vmatpush1.bf16.msra.mxu1 %v3619_v26 }
 0xaa1   :  { %3338 = vmatprep.subr.bf16.mxu1 %v3625_v42  ;;  %v3658_v42 = vld [vmem:[#allocation2 + $0xd4] ss:$8 sps:$4 sm:$0xff]  }
 0xb56   :  { %v987_v44 = vpop.f32.mrb[14].mxu1 }
 0xb57   :  { %1000 = vrot.lane.b32.xlu0 %v987_v44, %s3906_s22  ;;  %v3446_v45 = vpop.f32.mrb[15].mxu1  ;;  %v3626_v44 = vld [vmem:[#allocation7] sm:$0xff]  }
 0xb58   :  { %v3627_v45 = vld [vmem:[#allocation7 + $0x48] sm:$0xff]  }
 0xbc9   :  { %v1001_v49 = vpop.permute.xlu0 %1000 }
 0xbca   :  { %v1007_v50 = vsel %vm1006_vm6, %v1005_v48, %v1001_v49  ;;  %v3631_v48 = vld [vmem:[#allocation7 + $0x58] sm:$0xff]  }
 0xbcb   :  { %v1008_v51 = vpack.c.bf16 %v1007_v50, %v1007_v50  ;;  %v3632_v49 = vld [vmem:[#allocation7 + $0x18] sm:$0xff]   ;;  %v3633_v50 = vld [vmem:[#allocation7 + $0x60] sm:$0xff]  }
 0xbcd   :  { %3464 = vmatmul.mubr.bf16.vlgmr.msra.gmra.mrb[4].mxu0 %v1008_v51  ;;  %v3634_v51 = vld [vmem:[#allocation7 + $0x20] sm:$0xff]  }
 0xbce   :  { %1395 = vmatprep.mubr.bf16.mxu0 %v3899_v15  ;;  %1364 = vmatpush1.bf16.msra.mxu0 %v3580_v54  ;;  %v3637_v54 = vld [vmem:[#allocation7 + $0x70] sm:$0xff]  }
 0xbcf   :  { %1365 = vmatprep.subr.bf16.mxu0 %v3588_v58  ;;  %v3640_v58 = vld [vmem:[#allocation7 + $0x38] sm:$0xff]  }
 0xbd2   :  { %1366 = vmatpush1.bf16.msra.mxu0 %v3586_v21 }
 0xbd3   :  { %1367 = vmatprep.subr.bf16.mxu0 %v3594_v61 }
 0xbd6   :  { %1368 = vmatpush1.bf16.msra.mxu0 %v3592_v63 }
 0xbd7   :  { %1369 = vmatprep.subr.bf16.mxu0 %v3600_v29 }
 0xbda   :  { %1370 = vmatpush1.bf16.msra.mxu0 %v3598_v10 }
 0xca0   :  { %v1107_v1 = vpop.f32.mrb[4].mxu0 }
 0xca1   :  { %v4208_v2 = vadd.f32 %v1107_v1, %v4005_v0  ;;  %v3465_v3 = vpop.f32.mrb[5].mxu0  ;;  %v3606_v0 = vld [vmem:[#allocation5 + $0x8c] ss:$16 sps:$4 sm:$0xff]  }
 0xca2   :  { %v1110_v4 = vpop.f32.mrb[6].mxu0  ;;  %1371 = vmatprep.subr.bf16.mxu0 %v3606_v0 }
 0xca3   :  { %v3466_v6 = vpop.f32.mrb[7].mxu0  ;;  %v1115_v7 = vmul.f32 %v4208_v2, %v4208_v2  ;;  %1372 = vmatpush1.bf16.msra.mxu0 %v3604_v13 }
 0xca4   :  { %1373 = vmatprep.subr.bf16.mxu0 %v3612_v16 }
 0xca5   :  { %1116 = vadd.xlane.f32.xlu0 %v1115_v7 }
 0xca7   :  { %1374 = vmatpush1.bf16.msra.mxu0 %v3610_v18  ;;  %v3641_v18 = vld [vmem:[#allocation2 + $0x80] ss:$8 sps:$4 sm:$0xff]  }
 0xca8   :  { %1375 = vmatprep.subr.bf16.mxu0 %v3618_v20  ;;  %v3646_v20 = vld [vmem:[#allocation2 + $0x94] ss:$8 sps:$4 sm:$0xff]  }
 0xcab   :  { %1376 = vmatpush1.bf16.msra.mxu0 %v3616_v23  ;;  %v3649_v23 = vld [vmem:[#allocation2 + $0xa4] ss:$8 sps:$4 sm:$0xff]  }
 0xcac   :  { %1377 = vmatprep.subr.bf16.mxu0 %v3624_v25 }
 0xcaf   :  { %1378 = vmatpush1.bf16.msra.mxu0 %v3622_v30 }
 0xcb0   :  { %1705 = vmatprep.subr.bf16.mxu0 %v3643_v19 }
 0xd32   :  { %v1117_v31 = vpop.xlane.xlu0 %1116 }
 0xd33   :  { %v1118_v32 = vmul.f32 0.0078125, %v1117_v31 }
 0xd35   :  { %v1119_v35 = vadd.f32 1e-06, %v1118_v32 }
 0xd37   :  { %3755 = vrsqrt.f32 %v1119_v35 }
 0xd41   :  { %v3756_v37 = vpop.eup %3755 }
 0xd42   :  { %v1121_v39 = vmul.f32 %v3756_v37, %v4208_v2 }
 0xd44   :  { %v1128_v40 = vmul.f32 %v3155_v38, %v1121_v39  ;;  %v3652_v38 = vld [vmem:[#allocation2 + $0xb4] ss:$8 sps:$4 sm:$0xff]   ;;  %v3650_v39 = vld [vmem:[#allocation2 + $0xb0] ss:$8 sps:$4 sm:$0xff]  }
 0xd46   :  { %v1129_v41 = vpack.c.bf16 %v1128_v40, %v1128_v40  ;;  %v3653_v40 = vld [vmem:[#allocation2 + $0xc0] ss:$8 sps:$4 sm:$0xff]  }
 0xd48   :  { %1355 = vmatmul.mubr.bf16.vlgmr.msra.gmra.mrb[16].mxu1 %v1129_v41  ;;  %1396 = vmatmul.mubr.bf16.vlgmr.msra.gmra.mrb[8].mxu0 %v1129_v41  ;;  %v3655_v41 = vld [vmem:[#allocation2 + $0xc4] ss:$8 sps:$4 sm:$0xff]  }
 0xd49   :  { %1737 = vmatprep.mubr.bf16.mxu0 %v3899_v15  ;;  %3339 = vmatpush3.bf16.msra.mxu1 %v3626_v44  ;;  %v3656_v44 = vld [vmem:[#allocation2 + $0xd0] ss:$8 sps:$4 sm:$0xff]  }
 0xd4a   :  { %3340 = vmatprep.subr.bf16.mxu1 %v3627_v45  ;;  %1706 = vmatpush1.bf16.msra.mxu0 %v3641_v18  ;;  %v3661_v45 = vld [vmem:[#allocation2 + $0xe4] ss:$8 sps:$4 sm:$0xff]  }
 0xd4b   :  { %1707 = vmatprep.subr.bf16.mxu0 %v3646_v20 }
 0xd4d   :  { %3341 = vmatpush3.bf16.msra.mxu1 %v3628_v46  ;;  %v3659_v46 = vld [vmem:[#allocation2 + $0xe0] ss:$8 sps:$4 sm:$0xff]  }
 0xd4e   :  { %3342 = vmatprep.subr.bf16.mxu1 %v3629_v33  ;;  %1708 = vmatpush1.bf16.msra.mxu0 %v3644_v22  ;;  %v3662_v33 = vld [vmem:[#allocation2 + $0xf0] ss:$8 sps:$4 sm:$0xff]  }
 0xd4f   :  { %1709 = vmatprep.subr.bf16.mxu0 %v3649_v23 }
 0xd51   :  { %3343 = vmatpush3.bf16.msra.mxu1 %v3630_v47 }
 0xd52   :  { %3344 = vmatprep.subr.bf16.mxu1 %v3631_v48  ;;  %1710 = vmatpush1.bf16.msra.mxu0 %v3647_v24 }
 0xd53   :  { %1711 = vmatprep.subr.bf16.mxu0 %v3652_v38 }
 0xd55   :  { %3345 = vmatpush3.bf16.msra.mxu1 %v3632_v49 }
 0xd56   :  { %3346 = vmatprep.subr.bf16.mxu1 %v3633_v50  ;;  %1712 = vmatpush1.bf16.msra.mxu0 %v3650_v39 }
 0xd57   :  { %1713 = vmatprep.subr.bf16.mxu0 %v3655_v41 }
 0xd59   :  { %3347 = vmatpush3.bf16.msra.mxu1 %v3634_v51  ;;  %v3207_v51 = vld [vmem:[%s4419_s3 + $0x1] ss:$0 sm:$0xff] }
 0xd5a   :  { %3348 = vmatprep.subr.bf16.mxu1 %v3635_v52  ;;  %1714 = vmatpush1.bf16.msra.mxu0 %v3653_v40 }
 0xd5b   :  { %1715 = vmatprep.subr.bf16.mxu0 %v3658_v42 }
 0xd5d   :  { %3349 = vmatpush3.bf16.msra.mxu1 %v3636_v53 }
 0xd5e   :  { %3350 = vmatprep.subr.bf16.mxu1 %v3637_v54  ;;  %1716 = vmatpush1.bf16.msra.mxu0 %v3656_v44 }
 0xd5f   :  { %1717 = vmatprep.subr.bf16.mxu0 %v3661_v45 }
 0xd61   :  { %3351 = vmatpush3.bf16.msra.mxu1 %v3638_v55 }
 0xd62   :  { %3352 = vmatprep.subr.bf16.mxu1 %v3639_v57  ;;  %1718 = vmatpush1.bf16.msra.mxu0 %v3659_v46 }
 0xd65   :  { %3353 = vmatpush3.bf16.msra.mxu1 %v3640_v58 }
 0xd66   :  { %3467 = vmatprep.subr.mxu1 %v3900_v27 }
 0xe1b   :  { %v1356_v59 = vpop.f32.mrb[16].mxu1  ;;  %v1397_v21 = vpop.f32.mrb[8].mxu0 }
 0xe1c   :  { %v3188_v60 = vmul.f32 -1.442695, %v1356_v59  ;;  %v1358_v61 = vpop.f32.mrb[17].mxu1  ;;  %v1399_v62 = vpop.f32.mrb[9].mxu0 }
 0xe1d   :  { %v3189_v63 = vmul.f32 -1.442695, %v1358_v61  ;;  %v1360_v1 = vpop.f32.mrb[18].mxu1  ;;  %v1401_v3 = vpop.f32.mrb[10].mxu0 }
 0xe1e   :  { %3757 = vpow2.f32 %v3188_v60  ;;  %v1361_v4 = vpop.f32.mrb[19].mxu1  ;;  %v1402_v6 = vpop.f32.mrb[11].mxu0 }
 0xe1f   :  { %3759 = vpow2.f32 %v3189_v63 }
 0xe28   :  { %v3758_v7 = vpop.eup %3757 }
 0xe29   :  { %v3760_v8 = vpop.eup %3759  ;;  %v1410_v29 = vadd.f32 1.0, %v3758_v7 }
 0xe2a   :  { %v1411_v9 = vadd.f32 1.0, %v3760_v8 }
 0xe2b   :  { %3761 = vrcp.f32 %v1410_v29 }
 0xe2c   :  { %3763 = vrcp.f32 %v1411_v9 }
 0xe35   :  { %v3762_v10 = vpop.eup %3761 }
 0xe36   :  { %v3764_v11 = vpop.eup %3763  ;;  %v1416_v28 = vmul.f32 %v3762_v10, %v1356_v59 }
 0xe37   :  { %v1417_v13 = vmul.f32 %v3764_v11, %v1358_v61 }
 0xe38   :  { %v1418_v0 = vmul.f32 %v1416_v28, %v1397_v21 }
 0xe39   :  { %v1419_v14 = vmul.f32 %v1417_v13, %v1399_v62 }
 0xe3a   :  { %v1420_v17 = vpack.c.bf16 %v1418_v0, %v1418_v0 }
 0xe3b   :  { %v1421_v16 = vpack.c.bf16 %v1419_v14, %v1419_v14 }
 0xe3d   :  { %1582 = vmatprep.mubr.bf16.mxu1 %v1421_v16 }
 0xe3e   :  { %1583 = vmatmul.mubr.bf16.vlgmr.msra.gmra.mrb[20].mxu1 %v1420_v17 }
 0xe3f   :  { %3469 = vmatprep.mubr.msk.f32.mxu1 %vm3901_vm0, %v3900_v27 }
 0xf11   :  { %v3354_v25 = vpop.f32.mrb[20].mxu1 }
 0xf12   :  { %v3355_v26 = vpop.f32.mrb[21].mxu1 }
 0xf13   :  { %v3356_v30 = vadd.f32 %v3355_v26, %v3354_v25  ;;  %v3357_v31 = vpop.f32.mrb[22].mxu1 }
 0xf14   :  { %v3358_v32 = vpop.f32.mrb[23].mxu1 }
 0xf15   :  { %v4221_v35 = vadd.f32 %v3356_v30, %v4208_v2  ;;  %v3664_v2 = vld [vmem:[#allocation2 + $0xf4] ss:$8 sps:$4 sm:$0xff]  }
 0xf16   :  { %1719 = vmatprep.subr.bf16.mxu0 %v3664_v2 }
 0xf17   :  { %v1593_v37 = vmul.f32 %v4221_v35, %v4221_v35  ;;  %1720 = vmatpush1.bf16.msra.mxu0 %v3662_v33 }
 0xf18   :  { %3507 = vmatprep.subr.bf16.mxu0 %v3900_v27 }
 0xf19   :  { %1594 = vadd.xlane.f32.xlu1 %v1593_v37 }
 0xfa6   :  { %v1595_v47 = vpop.xlane.xlu1 %1594 }
 0xfa7   :  { %v1596_v48 = vmul.f32 0.0078125, %v1595_v47 }
 0xfa9   :  { %v1597_v49 = vadd.f32 1e-06, %v1596_v48 }
 0xfab   :  { %3765 = vrsqrt.f32 %v1597_v49 }
 0xfb5   :  { %v3766_v50 = vpop.eup %3765 }
 0xfb6   :  { %v1599_v52 = vmul.f32 %v3766_v50, %v4221_v35 }
 0xfb8   :  { %v1606_v53 = vmul.f32 %v3207_v51, %v1599_v52 }
 0xfba   :  { %v1607_v54 = vpack.c.bf16 %v1606_v53, %v1606_v53 }
 0xfbc   :  { %1738 = vmatmul.mubr.bf16.vlgmr.msra.gmra.mrb[12].mxu0 %v1607_v54 }
 0xfbd   :  { %3523 = vmatprep.mubr.msk.bf16.mxu0 %vm3901_vm0, %v3900_v27 }
0x108f   :  { %v4232_v55 = vpop.f32.mrb[12].mxu0 }
0x1090   :  { %v4234_v57 = vpop.f32.mrb[13].mxu0  ;;  %v4237_v58 = vsub.f32 0.0, %v4232_v55  ;;  %v1756_v29 = vmul.f32 %v4232_v55, %v4036_v34  ;;  %v1766_v38 = vmul.f32 %v4232_v55, %v4096_v12 }
0x1091   :  { %1807 = vrot.lane.b32.xlu1 %v4234_v57, %s3892_s24  ;;  %v1743_v59 = vpop.f32.mrb[14].mxu0  ;;  %v1801_v60 = vsub.f32 0.0, %v4234_v57  ;;  %v1811_v3 = vmul.f32 %v4234_v57, %v4036_v34  ;;  %v1821_v54 = vmul.f32 %v4234_v57, %v4096_v12 }
0x1092   :  { %1748 = vrot.lane.b32.xlu0 %v4237_v58, %s3902_s17  ;;  %v1744_v21 = vpop.f32.mrb[15].mxu0 }
0x1095   :  { %1762 = vrot.lane.b32.xlu1 %v4232_v55, %s3902_s17 }
0x1096   :  { %1803 = vrot.lane.b32.xlu0 %v1801_v60, %s3902_s17 }
0x109a   :  { %1752 = vrot.lane.b32.xlu0 %v4232_v55, %s3892_s24 }
0x109e   :  { %1759 = vrot.lane.b32.xlu0 %v4237_v58, %s3904_s19 }
0x1103   :  { %v1808_v62 = vpop.permute.xlu1 %1807 }
0x1104   :  { %v1749_v61 = vpop.permute.xlu0 %1748 }
0x1107   :  { %v1763_v10 = vpop.permute.xlu1 %1762 }
0x1108   :  { %v1804_v63 = vpop.permute.xlu0 %1803 }
0x1109   :  { %v1810_v1 = vsel %vm249_vm1, %v1804_v63, %v1808_v62 }
0x110a   :  { %v1812_v4 = vmul.f32 %v1810_v1, %v4049_v36 }
0x110c   :  { %v1813_v6 = vadd.f32 %v1812_v4, %v1811_v3  ;;  %v1753_v7 = vpop.permute.xlu0 %1752  ;;  %v1780_v4 = vmul.f32 %v4232_v55, %v4124_v43 }
0x110d   :  { %v1755_v8 = vsel %vm249_vm1, %v1749_v61, %v1753_v7 }
0x110e   :  { %v1757_v9 = vmul.f32 %v1755_v8, %v4049_v36  ;;  %3468 = vmatpush3.xpose.msk.msra.mxu1 %vm333_vm2, %v1813_v6  ;;  %v3795_v8 = vld [vmem:[%s4418_s2] sm:$0xff] }
0x110f   :  { %3472 = vmatprep.subr.mxu1 %v3900_v27 }
0x1110   :  { %v1758_v11 = vadd.f32 %v1757_v9, %v1756_v29  ;;  %v1760_v28 = vpop.permute.xlu0 %1759 }
0x1111   :  { %v1765_v13 = vsel %vm249_vm1, %v1760_v28, %v1763_v10 }
0x1112   :  { %v1767_v0 = vmul.f32 %v1765_v13, %v4049_v36  ;;  %3470 = vmatmul.mubr.msk.f32.vlgmr.msra.gmra.mrb[24].mxu1 %vm333_vm2, %v1758_v11 }
0x1113   :  { %3474 = vmatprep.mubr.msk.f32.mxu1 %vm3901_vm0, %v3900_v27 }
0x1114   :  { %1769 = vrot.lane.b32.xlu1 %v1767_v0, %s3903_s18 }
0x1186   :  { %v1770_v37 = vpop.permute.xlu1 %1769 }
0x1187   :  { %v1772_v39 = vadd.f32 %v1770_v37, %v1766_v38 }
0x11e5   :  { %v1900_v34 = vpop.f32.mrb[24].mxu1 }
0x11e6   :  { %v1904_v14 = vmul.f32 0.17677669, %v1900_v34  ;;  %v3471_v16 = vpop.f32.mrb[25].mxu1 }
0x11e8   :  { %v1905_v17 = vsel %vm4070_vm3, %v1904_v14, -1e+30 }
0x11e9   :  { %v1906_v18 = vsel %vm412_vm4, %v1905_v17, -inf }
0x11ea   :  { %1907 = vmax.xlane.f32.xlu0 %v1906_v18 }
0x1200   :  { %1917 = vrot.lane.b32.xlu0 %v4234_v57, %s3897_s4 }
0x1204   :  { %1814 = vrot.lane.b32.xlu0 %v1801_v60, %s3904_s19 }
0x1208   :  { %1817 = vrot.lane.b32.xlu0 %v4234_v57, %s3902_s17 }
0x120c   :  { %1776 = vrot.lane.b32.xlu0 %v4232_v55, %s3904_s19 }
0x1277   :  { %v1908_v19 = vpop.xlane.xlu0 %1907 }
0x1278   :  { %v1909_v20 = vsub.f32 %v1905_v17, %v1908_v19 }
0x127a   :  { %v1910_v22 = vmul.f32 1.442695, %v1909_v20 }
0x127b   :  { %v1918_v23 = vpop.permute.xlu0 %1917 }
0x127c   :  { %3767 = vpow2.f32 %v1910_v22  ;;  %3473 = vmatpush3.msra.mxu1 %v1918_v23 }
0x127d   :  { %3477 = vmatprep.subr.mxu1 %v3900_v27 }
0x127f   :  { %v1815_v24 = vpop.permute.xlu0 %1814 }
0x1283   :  { %v1818_v25 = vpop.permute.xlu0 %1817 }
0x1284   :  { %v1820_v26 = vsel %vm249_vm1, %v1815_v24, %v1818_v25 }
0x1285   :  { %v1822_v30 = vmul.f32 %v1820_v26, %v4049_v36  ;;  %v1794_v26 = vmul.f32 %v4232_v55, %v4149_v5 }
0x1286   :  { %v3768_v31 = vpop.eup %3767 }
0x1287   :  { %1824 = vrot.lane.b32.xlu0 %v1822_v30, %s3903_s18  ;;  %v1912_v32 = vsel %vm412_vm4, %v3768_v31, 0.0  ;;  %v1777_v42 = vpop.permute.xlu0 %1776 }
0x1288   :  { %1913 = vadd.xlane.f32.xlu1 %v1912_v32 }
0x1299   :  { %1994 = vrot.lane.b32.xlu1 %v1772_v39, %s3906_s22 }
0x129d   :  { %1773 = vrot.lane.b32.xlu1 %v4237_v58, %s3905_s1 }
0x12f9   :  { %v1825_v53 = vpop.permute.xlu0 %1824 }
0x12fa   :  { %v1827_v59 = vadd.f32 %v1825_v53, %v1821_v54  ;;  %v3669_v53 = vld [vmem:[%s4421_s5 + $0x60] sm:$0xff]   ;;  %v3670_v54 = vld [vmem:[%s4421_s5 + $0x68] sm:$0xff]  }
0x1315   :  { %v1914_v40 = vpop.xlane.xlu1 %1913 }
0x1316   :  { %3769 = vrcp.f32 %v1914_v40 }
0x1319   :  { %v1995_v41 = vpop.permute.xlu1 %1994 }
0x131d   :  { %v1774_v44 = vpop.permute.xlu1 %1773 }
0x131e   :  { %v1779_v45 = vsel %vm249_vm1, %v1774_v44, %v1777_v42 }
0x131f   :  { %v1781_v46 = vmul.f32 %v1779_v45, %v4049_v36 }
0x1320   :  { %v3770_v2 = vpop.eup %3769 }
0x1321   :  { %v1916_v33 = vmul.f32 %v3770_v2, %v3768_v31  ;;  %1783 = vrot.lane.b32.xlu0 %v1781_v46, %s3897_s4 }
0x1323   :  { %3475 = vmatmul.mubr.msk.f32.vlgmr.msra.gmra.mrb[26].mxu1 %vm412_vm4, %v1916_v33 }
0x1324   :  { %3478 = vmatpush3.xpose.msk.msra.mxu1 %vm333_vm2, %v1813_v6  ;;  %3479 = vmatprep.mubr.msk.f32.mxu1 %vm3901_vm0, %v3900_v27 }
0x1325   :  { %3482 = vmatprep.subr.mxu1 %v3900_v27 }
0x1327   :  { %3480 = vmatmul.mubr.msk.f32.vlgmr.msra.gmra.mrb[28].mxu1 %vm333_vm2, %v1995_v41 }
0x1328   :  { %3483 = vmatpush3.msra.mxu1 %v1918_v23  ;;  %3484 = vmatprep.mubr.msk.f32.mxu1 %vm3901_vm0, %v3900_v27 }
0x1329   :  { %3487 = vmatprep.subr.mxu1 %v3900_v27 }
0x1393   :  { %v1784_v12 = vpop.permute.xlu0 %1783 }
0x1394   :  { %v1786_v7 = vadd.f32 %v1784_v12, %v1780_v4 }
0x13f6   :  { %v4299_v36 = vpop.f32.mrb[26].mxu1 }
0x13f7   :  { %v3476_v47 = vpop.f32.mrb[27].mxu1 }
0x13fa   :  { %v2064_v48 = vpop.f32.mrb[28].mxu1 }
0x13fb   :  { %v2068_v49 = vmul.f32 0.17677669, %v2064_v48  ;;  %v3481_v50 = vpop.f32.mrb[29].mxu1 }
0x13fc   :  { %v3666_v50 = vld [vmem:[%s4421_s5 + $0x48] sm:$0xff]  }
0x13fd   :  { %v2069_v51 = vsel %vm4070_vm3, %v2068_v49, -1e+30  ;;  %v3665_v49 = vld [vmem:[%s4421_s5 + $0x40] sm:$0xff]  }
0x13fe   :  { %v2070_v52 = vsel %vm412_vm4, %v2069_v51, -inf  ;;  %3508 = vmatpush3.bf16.msra.mxu0 %v3665_v49  ;;  %v3722_v49 = vld [vmem:[#allocation7 + $0x80] sm:$0xff]  }
0x13ff   :  { %2071 = vmax.xlane.f32.xlu1 %v2070_v52  ;;  %3509 = vmatprep.subr.bf16.mxu0 %v3900_v27  ;;  %v3668_v52 = vld [vmem:[%s4421_s5 + $0x58] sm:$0xff]  }
0x1402   :  { %3510 = vmatpush3.bf16.msra.mxu0 %v3666_v50  ;;  %v3723_v50 = vld [vmem:[#allocation7 + $0xc8] sm:$0xff]  }
0x1403   :  { %3511 = vmatprep.subr.bf16.mxu0 %v3900_v27 }
0x1410   :  { %2158 = vrot.lane.b32.xlu1 %v1827_v59, %s3906_s22  ;;  %v3671_v59 = vld [vmem:[%s4421_s5 + $0x70] sm:$0xff]  }
0x1414   :  { %1787 = vrot.lane.b32.xlu1 %v4237_v58, %s3892_s24 }
0x1418   :  { %1790 = vrot.lane.b32.xlu1 %v4232_v55, %s3905_s1 }
0x148c   :  { %v2072_v21 = vpop.xlane.xlu1 %2071 }
0x148d   :  { %v2073_v60 = vsub.f32 %v2069_v51, %v2072_v21  ;;  %v3667_v51 = vld [vmem:[%s4421_s5 + $0x50] sm:$0xff]   ;;  %v3672_v21 = vld [vmem:[%s4421_s5 + $0x78] sm:$0xff]  }
0x148e   :  { %3512 = vmatpush3.bf16.msra.mxu0 %v3667_v51  ;;  %v3724_v51 = vld [vmem:[#allocation7 + $0x88] sm:$0xff]  }
0x148f   :  { %v2074_v61 = vmul.f32 1.442695, %v2073_v60  ;;  %3513 = vmatprep.subr.bf16.mxu0 %v3900_v27 }
0x1490   :  { %v2159_v1 = vpop.permute.xlu1 %2158 }
0x1491   :  { %3771 = vpow2.f32 %v2074_v61 }
0x1492   :  { %3514 = vmatpush3.bf16.msra.mxu0 %v3668_v52  ;;  %v3725_v52 = vld [vmem:[#allocation7 + $0xd0] sm:$0xff]  }
0x1493   :  { %3515 = vmatprep.subr.bf16.mxu0 %v3900_v27 }
0x1494   :  { %v1788_v3 = vpop.permute.xlu1 %1787 }
0x1496   :  { %3516 = vmatpush3.bf16.msra.mxu0 %v3669_v53  ;;  %v3726_v53 = vld [vmem:[#allocation7 + $0x90] sm:$0xff]  }
0x1497   :  { %3517 = vmatprep.subr.bf16.mxu0 %v3900_v27 }
0x1498   :  { %v1791_v6 = vpop.permute.xlu1 %1790 }
0x1499   :  { %v1793_v58 = vsel %vm249_vm1, %v1788_v3, %v1791_v6  ;;  %v3673_v6 = vld [vmem:[#allocation5 + $0x100] ss:$16 sps:$4 sm:$0xff]  }
0x149a   :  { %v1795_v29 = vmul.f32 %v3795_v8, %v1793_v58  ;;  %3518 = vmatpush3.bf16.msra.mxu0 %v3670_v54  ;;  %v3676_v58 = vld [vmem:[#allocation5 + $0x108] ss:$16 sps:$4 sm:$0xff]   ;;  %v3678_v8 = vld [vmem:[#allocation5 + $0x10c] ss:$16 sps:$4 sm:$0xff]  }
0x149b   :  { %v3772_v62 = vpop.eup %3771  ;;  %3519 = vmatprep.subr.bf16.mxu0 %v3900_v27  ;;  %v3727_v54 = vld [vmem:[#allocation7 + $0xd8] sm:$0xff]  }
0x149c   :  { %v2076_v63 = vsel %vm412_vm4, %v3772_v62, 0.0 }
0x149d   :  { %2077 = vadd.xlane.f32.xlu0 %v2076_v63 }
0x149e   :  { %3520 = vmatpush3.bf16.msra.mxu0 %v3671_v59  ;;  %v3728_v59 = vld [vmem:[#allocation7 + $0x98] sm:$0xff]  }
0x149f   :  { %3521 = vmatprep.subr.bf16.mxu0 %v3900_v27 }
0x14a2   :  { %3522 = vmatpush3.bf16.msra.mxu0 %v3672_v21  ;;  %v3729_v21 = vld [vmem:[#allocation7 + $0xe0] sm:$0xff]  }
0x14a3   :  { %2857 = vmatprep.subr.bf16.mxu0 %v3678_v8 }
0x14b3   :  { %2155 = vrot.lane.b32.xlu0 %v1786_v7, %s3897_s4  ;;  %v3675_v7 = vld [vmem:[#allocation5 + $0x104] ss:$16 sps:$4 sm:$0xff]  }
0x14b7   :  { %1797 = vrot.lane.b32.xlu0 %v1795_v29, %s3906_s22  ;;  %v3681_v29 = vld [vmem:[#allocation5 + $0x124] ss:$16 sps:$4 sm:$0xff]  }
0x152a   :  { %v2078_v9 = vpop.xlane.xlu0 %2077 }
0x152b   :  { %3773 = vrcp.f32 %v2078_v9  ;;  %v3684_v9 = vld [vmem:[#allocation5 + $0x12c] ss:$16 sps:$4 sm:$0xff]  }
0x152e   :  { %v2156_v43 = vpop.permute.xlu0 %2155 }
0x1532   :  { %v1798_v25 = vpop.permute.xlu0 %1797 }
0x1533   :  { %v1800_v30 = vadd.f32 %v1798_v25, %v1794_v26  ;;  %v3700_v25 = vld [vmem:[#allocation5 + $0x188] ss:$16 sps:$4 sm:$0xff]   ;;  %v3705_v26 = vld [vmem:[#allocation5 + $0x1a4] ss:$16 sps:$4 sm:$0xff]  }
0x1535   :  { %v3774_v10 = vpop.eup %3773 }
0x1536   :  { %v2080_v11 = vmul.f32 %v3774_v10, %v3772_v62  ;;  %v3679_v10 = vld [vmem:[#allocation5 + $0x120] ss:$16 sps:$4 sm:$0xff]  }
0x1538   :  { %3485 = vmatmul.mubr.msk.f32.vlgmr.msra.gmra.mrb[30].mxu1 %vm412_vm4, %v2080_v11  ;;  %v3687_v11 = vld [vmem:[#allocation5 + $0x144] ss:$16 sps:$4 sm:$0xff]  }
0x1539   :  { %3488 = vmatpush3.xpose.msk.msra.mxu1 %vm333_vm2, %v2159_v1  ;;  %3489 = vmatprep.mubr.msk.f32.mxu1 %vm3901_vm0, %v3900_v27 }
0x153a   :  { %3492 = vmatprep.subr.mxu1 %v3900_v27 }
0x153c   :  { %3490 = vmatmul.mubr.msk.f32.vlgmr.msra.gmra.mrb[32].mxu1 %vm333_vm2, %v2156_v43  ;;  %v3690_v43 = vld [vmem:[#allocation5 + $0x14c] ss:$16 sps:$4 sm:$0xff]  }
0x153d   :  { %3494 = vmatprep.mubr.msk.f32.mxu1 %vm3901_vm0, %v3900_v27 }
0x160b   :  { %v2150_v28 = vpop.f32.mrb[30].mxu1 }
0x160c   :  { %v3486_v13 = vpop.f32.mrb[31].mxu1 }
0x160f   :  { %v2230_v0 = vpop.f32.mrb[32].mxu1 }
0x1610   :  { %v2234_v34 = vmul.f32 0.17677669, %v2230_v0  ;;  %v3491_v14 = vpop.f32.mrb[33].mxu1 }
0x1612   :  { %v2235_v16 = vsel %vm4070_vm3, %v2234_v34, -1e+30 }
0x1613   :  { %v2236_v17 = vsel %vm412_vm4, %v2235_v16, -inf }
0x1614   :  { %2237 = vmax.xlane.f32.xlu1 %v2236_v17 }
0x1625   :  { %2247 = vrot.lane.b32.xlu1 %v4234_v57, %s3903_s18 }
0x16a1   :  { %v2238_v18 = vpop.xlane.xlu1 %2237 }
0x16a2   :  { %v2239_v19 = vsub.f32 %v2235_v16, %v2238_v18  ;;  %v3693_v18 = vld [vmem:[#allocation5 + $0x164] ss:$16 sps:$4 sm:$0xff]  }
0x16a4   :  { %v2240_v20 = vmul.f32 1.442695, %v2239_v19  ;;  %v3696_v19 = vld [vmem:[#allocation5 + $0x16c] ss:$16 sps:$4 sm:$0xff]  }
0x16a5   :  { %v2248_v22 = vpop.permute.xlu1 %2247 }
0x16a6   :  { %3775 = vpow2.f32 %v2240_v20  ;;  %3493 = vmatpush3.msra.mxu1 %v2248_v22  ;;  %v3691_v20 = vld [vmem:[#allocation5 + $0x160] ss:$16 sps:$4 sm:$0xff]  }
0x16a7   :  { %3497 = vmatprep.subr.mxu1 %v3900_v27 }
0x16b0   :  { %v3776_v23 = vpop.eup %3775 }
0x16b1   :  { %v2242_v24 = vsel %vm412_vm4, %v3776_v23, 0.0 }
0x16b2   :  { %2243 = vadd.xlane.f32.xlu0 %v2242_v24  ;;  %v3699_v24 = vld [vmem:[#allocation5 + $0x184] ss:$16 sps:$4 sm:$0xff]  }
0x16c8   :  { %2324 = vrot.lane.b32.xlu0 %v1800_v30, %s3903_s18  ;;  %v3708_v30 = vld [vmem:[#allocation5 + $0x1ac] ss:$16 sps:$4 sm:$0xff]  }
0x173f   :  { %v2244_v57 = vpop.xlane.xlu0 %2243 }
0x1740   :  { %3777 = vrcp.f32 %v2244_v57  ;;  %v3703_v57 = vld [vmem:[#allocation5 + $0x1a0] ss:$16 sps:$4 sm:$0xff]  }
0x1743   :  { %v2325_v37 = vpop.permute.xlu0 %2324 }
0x174a   :  { %v3778_v31 = vpop.eup %3777 }
0x174b   :  { %v2246_v32 = vmul.f32 %v3778_v31, %v3776_v23  ;;  %v3697_v23 = vld [vmem:[#allocation5 + $0x180] ss:$16 sps:$4 sm:$0xff]   ;;  %v3706_v31 = vld [vmem:[#allocation5 + $0x1a8] ss:$16 sps:$4 sm:$0xff]  }
0x174d   :  { %3495 = vmatmul.mubr.msk.f32.vlgmr.msra.gmra.mrb[34].mxu1 %vm412_vm4, %v2246_v32  ;;  %v3711_v32 = vld [vmem:[#allocation5 + $0x1c4] ss:$16 sps:$4 sm:$0xff]  }
0x174e   :  { %3498 = vmatpush3.xpose.msk.msra.mxu1 %vm333_vm2, %v2159_v1  ;;  %3499 = vmatprep.mubr.msk.f32.mxu1 %vm3901_vm0, %v3900_v27 }
0x174f   :  { %3502 = vmatprep.subr.mxu1 %v3900_v27 }
0x1751   :  { %3500 = vmatmul.mubr.msk.f32.vlgmr.msra.gmra.mrb[36].mxu1 %vm333_vm2, %v2325_v37  ;;  %v3714_v37 = vld [vmem:[#allocation5 + $0x1cc] ss:$16 sps:$4 sm:$0xff]  }
0x1752   :  { %3503 = vmatpush3.msra.mxu1 %v2248_v22  ;;  %3504 = vmatprep.mubr.msk.f32.mxu1 %vm3901_vm0, %v3900_v27  ;;  %v3694_v22 = vld [vmem:[#allocation5 + $0x168] ss:$16 sps:$4 sm:$0xff]  }
0x1753   :  { %2816 = vmatprep.subr.bf16.mxu1 %v3675_v7 }
0x1820   :  { %v2319_v5 = vpop.f32.mrb[34].mxu1 }
0x1821   :  { %v3496_v55 = vpop.f32.mrb[35].mxu1 }
0x1822   :  { %v3712_v55 = vld [vmem:[#allocation5 + $0x1c8] ss:$16 sps:$4 sm:$0xff]  }
0x1824   :  { %v2394_v38 = vpop.f32.mrb[36].mxu1 }
0x1825   :  { %v2398_v39 = vmul.f32 0.17677669, %v2394_v38  ;;  %v3501_v40 = vpop.f32.mrb[37].mxu1  ;;  %v3717_v38 = vld [vmem:[#allocation5 + $0x1e4] ss:$16 sps:$4 sm:$0xff]  }
0x1826   :  { %v3715_v40 = vld [vmem:[#allocation5 + $0x1e0] ss:$16 sps:$4 sm:$0xff]  }
0x1827   :  { %v2399_v41 = vsel %vm4070_vm3, %v2398_v39, -1e+30  ;;  %v3720_v39 = vld [vmem:[#allocation5 + $0x1ec] ss:$16 sps:$4 sm:$0xff]  }
0x1828   :  { %v2400_v42 = vsel %vm412_vm4, %v2399_v41, -inf }
0x1829   :  { %2401 = vmax.xlane.f32.xlu1 %v2400_v42 }
0x183a   :  { %2485 = vrot.lane.b32.xlu1 %v2150_v28, %s3903_s18  ;;  %v3685_v28 = vld [vmem:[#allocation5 + $0x140] ss:$16 sps:$4 sm:$0xff]  }
0x18b6   :  { %v2402_v44 = vpop.xlane.xlu1 %2401 }
0x18b7   :  { %v2403_v45 = vsub.f32 %v2399_v41, %v2402_v44  ;;  %v3718_v41 = vld [vmem:[#allocation5 + $0x1e8] ss:$16 sps:$4 sm:$0xff]  }
0x18b9   :  { %v2404_v46 = vmul.f32 1.442695, %v2403_v45 }
0x18ba   :  { %v2486_v62 = vpop.permute.xlu1 %2485 }
0x18bb   :  { %3779 = vpow2.f32 %v2404_v46  ;;  %v2496_v1 = vsel %vm333_vm2, %v4299_v36, %v2486_v62  ;;  %v3682_v36 = vld [vmem:[#allocation5 + $0x128] ss:$16 sps:$4 sm:$0xff]  }
0x18bc   :  { %v3732_v62 = vld [vmem:[#allocation7 + $0xa8] sm:$0xff]  }
0x18c5   :  { %v3780_v2 = vpop.eup %3779 }
0x18c6   :  { %v2406_v33 = vsel %vm412_vm4, %v3780_v2, 0.0 }
0x18c7   :  { %2407 = vadd.xlane.f32.xlu0 %v2406_v33 }
0x18dd   :  { %2489 = vrot.lane.b32.xlu0 %v2319_v5, %s3897_s4  ;;  %v3709_v5 = vld [vmem:[#allocation5 + $0x1c0] ss:$16 sps:$4 sm:$0xff]  }
0x1954   :  { %v2408_v47 = vpop.xlane.xlu0 %2407 }
0x1955   :  { %3781 = vrcp.f32 %v2408_v47 }
0x1958   :  { %v2490_v63 = vpop.permute.xlu0 %2489 }
0x1959   :  { %v2497_v3 = vsel %vm1004_vm5, %v2496_v1, %v2490_v63  ;;  %v3733_v63 = vld [vmem:[#allocation7 + $0xf0] sm:$0xff]  }
0x195a   :  { %v3734_v1 = vld [vmem:[#allocation7 + $0xb0] sm:$0xff]  }
0x195f   :  { %v3782_v48 = vpop.eup %3781 }
0x1960   :  { %v2410_v56 = vmul.f32 %v3782_v48, %v3780_v2  ;;  %v3261_v2 = vld [vmem:[%s4422_s6 + $0x1] ss:$0 sm:$0xff] }
0x1962   :  { %3505 = vmatmul.mubr.msk.f32.vlgmr.msra.gmra.mrb[38].mxu1 %vm412_vm4, %v2410_v56  ;;  %v3721_v56 = vld [vmem:[#allocation7 + $0xc0] sm:$0xff]  }
0x1963   :  { %2848 = vmatprep.mubr.bf16.mxu1 %v3899_v15  ;;  %2817 = vmatpush1.bf16.msra.mxu1 %v3673_v6 }
0x1964   :  { %2818 = vmatprep.subr.bf16.mxu1 %v3681_v29 }
0x1967   :  { %2819 = vmatpush1.bf16.msra.mxu1 %v3679_v10 }
0x1968   :  { %2820 = vmatprep.subr.bf16.mxu1 %v3687_v11 }
0x196b   :  { %2821 = vmatpush1.bf16.msra.mxu1 %v3685_v28 }
0x196c   :  { %2822 = vmatprep.subr.bf16.mxu1 %v3693_v18 }
0x196f   :  { %2823 = vmatpush1.bf16.msra.mxu1 %v3691_v20 }
0x1970   :  { %2824 = vmatprep.subr.bf16.mxu1 %v3699_v24 }
0x1973   :  { %2825 = vmatpush1.bf16.msra.mxu1 %v3697_v23 }
0x1974   :  { %2826 = vmatprep.subr.bf16.mxu1 %v3705_v26 }
0x1977   :  { %2827 = vmatpush1.bf16.msra.mxu1 %v3703_v57 }
0x1978   :  { %2828 = vmatprep.subr.bf16.mxu1 %v3711_v32 }
0x197b   :  { %2829 = vmatpush1.bf16.msra.mxu1 %v3709_v5  ;;  %v3312_v5 = vld [vmem:[%s4425_s9] ss:$0 sm:$0xff] }
0x197c   :  { %2830 = vmatprep.subr.bf16.mxu1 %v3717_v38 }
0x197f   :  { %2831 = vmatpush1.bf16.msra.mxu1 %v3715_v40 }
0x1980   :  { %3385 = vmatprep.subr.bf16.mxu1 %v3721_v56 }
0x1a35   :  { %v2480_v60 = vpop.f32.mrb[38].mxu1 }
0x1a36   :  { %2493 = vrot.lane.b32.xlu1 %v2480_v60, %s3906_s22  ;;  %v3506_v61 = vpop.f32.mrb[39].mxu1  ;;  %v3730_v60 = vld [vmem:[#allocation7 + $0xa0] sm:$0xff]  }
0x1a37   :  { %v3731_v61 = vld [vmem:[#allocation7 + $0xe8] sm:$0xff]  }
0x1aa8   :  { %v2494_v12 = vpop.permute.xlu1 %2493 }
0x1aa9   :  { %v2498_v4 = vsel %vm1006_vm6, %v2497_v3, %v2494_v12  ;;  %v3735_v3 = vld [vmem:[#allocation7 + $0xf8] sm:$0xff]  }
0x1aaa   :  { %v2499_v27 = vpack.c.bf16 %v2498_v4, %v2498_v4  ;;  %v3736_v12 = vld [vmem:[#allocation7 + $0xb8] sm:$0xff]  }
0x1aac   :  { %3524 = vmatmul.mubr.bf16.vlgmr.msra.gmra.mrb[16].mxu0 %v2499_v27 }
0x1aad   :  { %2889 = vmatprep.mubr.bf16.mxu0 %v3899_v15  ;;  %2858 = vmatpush1.bf16.msra.mxu0 %v3676_v58  ;;  %v3688_v15 = vld [vmem:[#allocation5 + $0x148] ss:$16 sps:$4 sm:$0xff]  }
0x1aae   :  { %2859 = vmatprep.subr.bf16.mxu0 %v3684_v9 }
0x1ab1   :  { %2860 = vmatpush1.bf16.msra.mxu0 %v3682_v36 }
0x1ab2   :  { %2861 = vmatprep.subr.bf16.mxu0 %v3690_v43 }
0x1ab5   :  { %2862 = vmatpush1.bf16.msra.mxu0 %v3688_v15 }
0x1ab6   :  { %2863 = vmatprep.subr.bf16.mxu0 %v3696_v19 }
0x1ab9   :  { %2864 = vmatpush1.bf16.msra.mxu0 %v3694_v22 }
0x1b7f   :  { %v2599_v13 = vpop.f32.mrb[16].mxu0 }
0x1b80   :  { %v4392_v0 = vadd.f32 %v2599_v13, %v4221_v35  ;;  %v3525_v34 = vpop.f32.mrb[17].mxu0  ;;  %v3702_v35 = vld [vmem:[#allocation5 + $0x18c] ss:$16 sps:$4 sm:$0xff]  }
0x1b81   :  { %v2602_v14 = vpop.f32.mrb[18].mxu0  ;;  %2865 = vmatprep.subr.bf16.mxu0 %v3702_v35 }
0x1b82   :  { %v3526_v16 = vpop.f32.mrb[19].mxu0  ;;  %v2608_v17 = vmul.f32 %v4392_v0, %v4392_v0  ;;  %2866 = vmatpush1.bf16.msra.mxu0 %v3700_v25 }
0x1b83   :  { %2867 = vmatprep.subr.bf16.mxu0 %v3708_v30 }
0x1b84   :  { %2609 = vadd.xlane.f32.xlu1 %v2608_v17 }
0x1b86   :  { %2868 = vmatpush1.bf16.msra.mxu0 %v3706_v31 }
0x1b87   :  { %2869 = vmatprep.subr.bf16.mxu0 %v3714_v37 }
0x1b8a   :  { %2870 = vmatpush1.bf16.msra.mxu0 %v3712_v55 }
0x1b8b   :  { %2871 = vmatprep.subr.bf16.mxu0 %v3720_v39 }
0x1b8e   :  { %2872 = vmatpush1.bf16.msra.mxu0 %v3718_v41 }
0x1c11   :  { %v2610_v42 = vpop.xlane.xlu1 %2609 }
0x1c12   :  { %v2611_v44 = vmul.f32 0.0078125, %v2610_v42 }
0x1c14   :  { %v2612_v45 = vadd.f32 1e-06, %v2611_v44 }
0x1c16   :  { %3783 = vrsqrt.f32 %v2612_v45 }
0x1c20   :  { %v3784_v46 = vpop.eup %3783 }
0x1c21   :  { %v2614_v33 = vmul.f32 %v3784_v46, %v4392_v0 }
0x1c23   :  { %v2621_v47 = vmul.f32 %v3261_v2, %v2614_v33 }
0x1c25   :  { %v2622_v48 = vpack.c.bf16 %v2621_v47, %v2621_v47 }
0x1c27   :  { %2849 = vmatmul.mubr.bf16.vlgmr.msra.gmra.mrb[40].mxu1 %v2622_v48  ;;  %2890 = vmatmul.mubr.bf16.vlgmr.msra.gmra.mrb[20].mxu0 %v2622_v48 }
0x1c28   :  { %3386 = vmatpush3.bf16.msra.mxu1 %v3722_v49 }
0x1c29   :  { %3387 = vmatprep.subr.bf16.mxu1 %v3723_v50 }
0x1c2c   :  { %3388 = vmatpush3.bf16.msra.mxu1 %v3724_v51 }
0x1c2d   :  { %3389 = vmatprep.subr.bf16.mxu1 %v3725_v52 }
0x1c30   :  { %3390 = vmatpush3.bf16.msra.mxu1 %v3726_v53 }
0x1c31   :  { %3391 = vmatprep.subr.bf16.mxu1 %v3727_v54 }
0x1c34   :  { %3392 = vmatpush3.bf16.msra.mxu1 %v3728_v59 }
0x1c35   :  { %3393 = vmatprep.subr.bf16.mxu1 %v3729_v21 }
0x1c38   :  { %3394 = vmatpush3.bf16.msra.mxu1 %v3730_v60 }
0x1c39   :  { %3395 = vmatprep.subr.bf16.mxu1 %v3731_v61 }
0x1c3c   :  { %3396 = vmatpush3.bf16.msra.mxu1 %v3732_v62 }
0x1c3d   :  { %3397 = vmatprep.subr.bf16.mxu1 %v3733_v63 }
0x1c40   :  { %3398 = vmatpush3.bf16.msra.mxu1 %v3734_v1 }
0x1c41   :  { %3399 = vmatprep.subr.bf16.mxu1 %v3735_v3 }
0x1c44   :  { %3400 = vmatpush3.bf16.msra.mxu1 %v3736_v12 }
0x1cfa   :  { %v2850_v4 = vpop.f32.mrb[40].mxu1  ;;  %v2891_v27 = vpop.f32.mrb[20].mxu0 }
0x1cfb   :  { %v3294_v6 = vmul.f32 -1.442695, %v2850_v4  ;;  %v2852_v7 = vpop.f32.mrb[41].mxu1  ;;  %v2893_v58 = vpop.f32.mrb[21].mxu0 }
0x1cfc   :  { %v3295_v8 = vmul.f32 -1.442695, %v2852_v7  ;;  %v2854_v29 = vpop.f32.mrb[42].mxu1  ;;  %v2895_v9 = vpop.f32.mrb[22].mxu0 }
0x1cfd   :  { %3785 = vpow2.f32 %v3294_v6  ;;  %v2855_v10 = vpop.f32.mrb[43].mxu1  ;;  %v2896_v36 = vpop.f32.mrb[23].mxu0 }
0x1cfe   :  { %3787 = vpow2.f32 %v3295_v8 }
0x1d07   :  { %v3786_v11 = vpop.eup %3785 }
0x1d08   :  { %v3788_v43 = vpop.eup %3787  ;;  %v2904_v28 = vadd.f32 1.0, %v3786_v11 }
0x1d09   :  { %v2905_v15 = vadd.f32 1.0, %v3788_v43 }
0x1d0a   :  { %3789 = vrcp.f32 %v2904_v28 }
0x1d0b   :  { %3791 = vrcp.f32 %v2905_v15 }
0x1d14   :  { %v3790_v13 = vpop.eup %3789 }
0x1d15   :  { %v3792_v34 = vpop.eup %3791  ;;  %v2910_v14 = vmul.f32 %v3790_v13, %v2850_v4 }
0x1d16   :  { %v2911_v16 = vmul.f32 %v3792_v34, %v2852_v7 }
0x1d17   :  { %v2912_v17 = vmul.f32 %v2910_v14, %v2891_v27 }
0x1d18   :  { %v2913_v18 = vmul.f32 %v2911_v16, %v2893_v58 }
0x1d19   :  { %v2914_v20 = vpack.c.bf16 %v2912_v17, %v2912_v17 }
0x1d1a   :  { %v2915_v19 = vpack.c.bf16 %v2913_v18, %v2913_v18 }
0x1d1c   :  { %3077 = vmatprep.mubr.bf16.mxu1 %v2915_v19 }
0x1d1d   :  { %3078 = vmatmul.mubr.bf16.vlgmr.msra.gmra.mrb[44].mxu1 %v2914_v20 }
0x1df0   :  { %v3401_v22 = vpop.f32.mrb[44].mxu1 }
0x1df1   :  { %v3402_v23 = vpop.f32.mrb[45].mxu1 }
0x1df2   :  { %v3403_v24 = vadd.f32 %v3402_v23, %v3401_v22  ;;  %v3404_v25 = vpop.f32.mrb[46].mxu1 }
0x1df3   :  { %v3405_v35 = vpop.f32.mrb[47].mxu1 }
0x1df4   :  { %v3085_v26 = vadd.f32 %v3403_v24, %v4392_v0 }
0x1df6   :  { %v3087_v30 = vmul.f32 %v3085_v26, %v3085_v26 }
0x1df8   :  { %3088 = vadd.xlane.f32.xlu0 %v3087_v30 }
0x1e85   :  { %v3089_v57 = vpop.xlane.xlu0 %3088 }
0x1e86   :  { %v3090_v31 = vmul.f32 0.0078125, %v3089_v57 }
0x1e88   :  { %v3091_v32 = vadd.f32 1e-06, %v3090_v31 }
0x1e8a   :  { %3793 = vrsqrt.f32 %v3091_v32 }
0x1e94   :  { %v3794_v37 = vpop.eup %3793 }
0x1e95   :  { %v3093_v55 = vmul.f32 %v3794_v37, %v3085_v26 }
0x1e97   :  { %v3100_v38 = vmul.f32 %v3312_v5, %v3093_v55 }
0x1e99   :  { %3101 = vst [vmem:[#allocation8] sm:$0xff] %v3100_v38 }
0x1e9a   :  { %3873 = shalt.err (!%p3870_p0)
}
0x1e9b   :  { %s3874_s23 = scalar_lea.hbm %s4426_s10, 128 }
0x1e9c   :  { %p3875_p1 = scmp.ne.s32.totalorder %s4426_s10, %s3874_s23  ;;  %p3878_p2 = scmp.lt.u32.totalorder %s3874_s23, %s4426_s10 }
0x1e9e   :  { %p3880_p3 = pnand %p3878_p2, %p3875_p1 }
0x1ea0   :  { %3883 = shalt.err (!%p3880_p3)
}
0x1ea1   :  { %3111 = dma.vmem_to_hbm [thread:$0]  %s3109_s7, 128, %s4426_s10, [#allocation4]  }
0x1ea2   :  { %3888 = dma.done.wait [#allocation4], 128  }
0x1ea3   :  { %3889 = vsyncadd [#allocation4], 4294967168 }
0x1ea4   :  { %3115 = vsyncpa [#allocation3], 1 }
0x1ea5   :  { %3116 = vsyncpa [#allocation6], 1 }
0x1ea6   :  { %3117 = vsyncpa [#allocation4], 1 }

</bundles_post_ra>
